<compile_context>
chip_gen: v5e
topology: v5e:2x2
jax: 0.10.0
libtpu: 0.0.40
codegen_flags: <defaults>
</compile_context>

<pallas_src>
import functools
import math

import jax
import jax.numpy as jnp
from jax.experimental import pallas as pl
from jax.experimental.pallas import tpu as pltpu

NUM_GROUPS = 32   # nn.GroupNorm(32, out_channels)
GN_EPS = 1e-5


# ----------------------------------------------------------------------------
# Static interpolation tables (align_corners=True).
# ----------------------------------------------------------------------------
def _two_tap(lin, lout):
    """Python (index, frac) tables for 1-D align_corners=True interpolation."""
    lo, frac = [], []
    for v in range(lout):
        if lin == 1:
            lo.append(0)
            frac.append(0.0)
            continue
        src = v * (lin - 1) / (lout - 1)
        l = min(int(math.floor(src)), lin - 2)
        lo.append(l)
        frac.append(src - l)
    return lo, frac


def _interp_matrix_align_corners(lin, lout):
    """(lout, lin) bilinear weight matrix, PyTorch align_corners=True."""
    if lin == 1:
        return jnp.ones((lout, 1), jnp.float32)
    lo, frac = _two_tap(lin, lout)
    lo = jnp.asarray(lo, jnp.int32)
    frac = jnp.asarray(frac, jnp.float32)
    rows = jnp.arange(lout)
    A = jnp.zeros((lout, lin), jnp.float32)
    A = A.at[rows, lo].add(1.0 - frac)
    A = A.at[rows, lo + 1].add(frac)
    return A


# ----------------------------------------------------------------------------
# Fused kernel: 3x3 conv (stride 1, pad 1, no bias) + GroupNorm(32) + ReLU
# + optional 2x bilinear upsample.  One grid step per batch element.
# ----------------------------------------------------------------------------
def _block_kernel(*refs, H, W, Cin, Cout, upsample):
    if upsample:
        (x_ref, w_ref, gamma_ref, beta_ref, gmat_ref, ah_ref, fe_ref, fo_ref,
         o_ref, xpad_ref, acc_ref) = refs
    else:
        (x_ref, w_ref, gamma_ref, beta_ref, gmat_ref,
         o_ref, xpad_ref, acc_ref) = refs

    HW = H * W
    K3 = 3 * Cin
    pdt = xpad_ref.dtype

    # ---- conv halo: refresh only the zero border strips ---------------------
    # Scratch persists across grid steps and the interior is fully overwritten
    # every step, so the full-buffer zero (a (H+2)(W+2)*Cin store per image)
    # is dropped.  Strips (not a program_id==0 guard) stay correct if the grid
    # axis is sharded across TensorCores.
    xpad_ref[0:1, :, :] = jnp.zeros((1, W + 2, Cin), pdt)
    xpad_ref[H + 1:H + 2, :, :] = jnp.zeros((1, W + 2, Cin), pdt)
    xpad_ref[1:H + 1, 0:1, :] = jnp.zeros((H, 1, Cin), pdt)
    xpad_ref[1:H + 1, W + 1:W + 2, :] = jnp.zeros((H, 1, Cin), pdt)
    xpad_ref[1:H + 1, 1:W + 1, :] = x_ref[0].astype(pdt)

    # ---- 3x3 conv: 3 MXU dots with K = 3*Cin (taps of a row packed on C) ----
    # bf16 MXU operands, f32 accumulator in VMEM scratch.
    for dy in range(3):
        patch = jnp.concatenate(
            [xpad_ref[dy:dy + H, 0:W, :],
             xpad_ref[dy:dy + H, 1:W + 1, :],
             xpad_ref[dy:dy + H, 2:W + 2, :]],
            axis=-1,
        ).reshape(HW, K3).astype(jnp.bfloat16)
        part = jnp.dot(patch, w_ref[dy], preferred_element_type=jnp.float32)
        if dy == 0:
            acc_ref[...] = part              # init with first tap-row's result
        else:
            acc_ref[...] += part

    # ---- GroupNorm(32) + ReLU (stats in f32) --------------------------------
    acc = acc_ref[...]                                        # (HW, Cout) f32
    inv_n = 1.0 / float(HW * (Cout // NUM_GROUPS))
    s1 = jnp.sum(acc, axis=0, keepdims=True)                  # (1, Cout)
    s2 = jnp.sum(acc * acc, axis=0, keepdims=True)            # (1, Cout)
    gs1 = jnp.dot(s1, gmat_ref[...], preferred_element_type=jnp.float32)
    gs2 = jnp.dot(s2, gmat_ref[...], preferred_element_type=jnp.float32)
    mean = gs1 * inv_n
    # One-pass E[x^2]-mean^2 can cancel slightly negative: clamp before rsqrt.
    var = jnp.maximum(gs2 * inv_n - mean * mean, 0.0)
    inv = jax.lax.rsqrt(var + GN_EPS)
    y = jnp.maximum((acc - mean) * (inv * gamma_ref[...]) + beta_ref[...], 0.0)

    # ---- epilogue: optional fused 2x bilinear upsample ----------------------
    if upsample:
        Ho, Wo = 2 * H, 2 * W
        y3 = y.reshape(H, W, Cout)
        fe = fe_ref[...]                                      # (1, W, 1) f32
        fo = fo_ref[...]                                      # (1, W, 1) f32
        # Vectorized two-tap W interpolation (no per-column Python loop):
        #   even output column 2j   = (1-fe[j])*y[:, j-1] + fe[j]*y[:, j]
        #   odd  output column 2j+1 = (1-fo[j])*y[:, j]   + fo[j]*y[:, j+1]
        # with clamped shifts handling the edge columns (frac 0 / 1).
        y_l = jnp.concatenate([y3[:, 0:1, :], y3[:, 0:W - 1, :]], axis=1)
        y_r = jnp.concatenate([y3[:, 1:W, :], y3[:, W - 1:W, :]], axis=1)
        even = (1.0 - fe) * y_l + fe * y3
        odd = (1.0 - fo) * y3 + fo * y_r
        # (H, W, 2*Cout) -> (H, Wo*Cout): lane-dense, with output columns
        # interleaved in the correct order (even_j then odd_j per source j).
        yw = jnp.concatenate([even, odd], axis=-1).reshape(H, Wo * Cout)
        # H interpolation: one (Ho, H) x (H, Wo*Cout) bf16 MXU matmul.
        out = jnp.dot(ah_ref[...], yw.astype(jnp.bfloat16),
                      preferred_element_type=jnp.float32)
        o_ref[...] = out.reshape(1, Ho, Wo * Cout).astype(o_ref.dtype)
    else:
        # Lane-dense store (W*Cout lanes) avoids masked vst at Cout < 128.
        o_ref[...] = y.reshape(1, H, W * Cout).astype(o_ref.dtype)


def _vmem_limit_bytes():
    """Per-generation VMEM limit with headroom (never all of v7x's 64 MiB)."""
    try:
        cap = int(getattr(pltpu.get_tpu_info(), "vmem_capacity_bytes", 0))
    except Exception:
        cap = 0
    if cap <= 0:
        return 48 * 1024 * 1024
    return int(min(max(cap - 16 * 1024 * 1024, 32 * 1024 * 1024),
                   100 * 1024 * 1024))


def conv3x3_gn_relu_upsample(x_nhwc, w3_bf16, gamma, beta, gmat, upsample,
                             out_dtype):
    """One Conv3x3GNReLU block (optionally + 2x bilinear upsample), NHWC."""
    N, H, W, Cin = x_nhwc.shape
    Cout = w3_bf16.shape[-1]
    assert Cout % NUM_GROUPS == 0

    Ho, Wo = (2 * H, 2 * W) if upsample else (H, W)

    kernel = functools.partial(_block_kernel, H=H, W=W, Cin=Cin, Cout=Cout,
                               upsample=upsample)

    in_specs = [
        pl.BlockSpec((1, H, W, Cin), lambda n: (n, 0, 0, 0)),
        pl.BlockSpec((3, 3 * Cin, Cout), lambda n: (0, 0, 0)),
        pl.BlockSpec((1, Cout), lambda n: (0, 0)),
        pl.BlockSpec((1, Cout), lambda n: (0, 0)),
        pl.BlockSpec((Cout, Cout), lambda n: (0, 0)),
    ]
    args = [x_nhwc, w3_bf16, gamma, beta, gmat]
    if upsample:
        ah = _interp_matrix_align_corners(H, Ho).astype(jnp.bfloat16)
        _, frac = _two_tap(W, Wo)
        fe = jnp.asarray(frac[0::2], jnp.float32).reshape(1, W, 1)
        fo = jnp.asarray(frac[1::2], jnp.float32).reshape(1, W, 1)
        in_specs += [
            pl.BlockSpec((Ho, H), lambda n: (0, 0)),
            pl.BlockSpec((1, W, 1), lambda n: (0, 0, 0)),
            pl.BlockSpec((1, W, 1), lambda n: (0, 0, 0)),
        ]
        args += [ah, fe, fo]

    out = pl.pallas_call(
        kernel,
        out_shape=jax.ShapeDtypeStruct((N, Ho, Wo * Cout), out_dtype),
        grid=(N,),
        in_specs=in_specs,
        out_specs=pl.BlockSpec((1, Ho, Wo * Cout), lambda n: (n, 0, 0)),
        scratch_shapes=[
            pltpu.VMEM((H + 2, W + 2, Cin), jnp.float32),   # padded conv input
            pltpu.VMEM((H * W, Cout), jnp.float32),         # conv accumulator
        ],
        compiler_params=pltpu.CompilerParams(
            dimension_semantics=("parallel",),
            vmem_limit_bytes=_vmem_limit_bytes(),
        ),
    )(*args)

    # Lane-dense (N, Ho, Wo*Cout) -> NHWC; contiguous reshape, free in XLA.
    return out.reshape(N, Ho, Wo, Cout)


# ----------------------------------------------------------------------------
# SegmentationBlock: parameters + forward (NCHW in/out, NHWC internally)
# ----------------------------------------------------------------------------
class SegmentationBlockPallas:
    def __init__(self, in_channels, out_channels, n_upsamples=0, *, key):
        assert out_channels % NUM_GROUPS == 0
        cpg = out_channels // NUM_GROUPS
        gidx = jnp.arange(out_channels) // cpg
        # Group-sum matrix: 1 where two channels share a GroupNorm group.
        self.gmat = (gidx[:, None] == gidx[None, :]).astype(jnp.float32)

        self.blocks = []
        cin = in_channels
        for _ in range(max(1, n_upsamples)):
            key, wk = jax.random.split(key)
            # Conv2d(cin, out, 3, padding=1, bias=False) weight, HWIO.
            w = 0.05 * jax.random.normal(wk, (3, 3, cin, out_channels),
                                         jnp.float32)
            # (kh, kw, cin, cout) -> (kh, kw*cin, cout); fed to MXU as bf16.
            w3 = w.reshape(3, 3 * cin, out_channels).astype(jnp.bfloat16)
            gamma = jnp.ones((1, out_channels), jnp.float32)   # GN defaults
            beta = jnp.zeros((1, out_channels), jnp.float32)
            self.blocks.append((w3, gamma, beta, bool(n_upsamples)))
            cin = out_channels

    def __call__(self, x_nchw):
        x = jnp.transpose(x_nchw, (0, 2, 3, 1))     # NCHW -> NHWC
        n_blocks = len(self.blocks)
        for b, (w3, gamma, beta, upsample) in enumerate(self.blocks):
            # Intermediate activations stay bf16 (conv already runs in bf16);
            # only the final block emits f32.
            out_dtype = jnp.float32 if b == n_blocks - 1 else jnp.bfloat16
            x = conv3x3_gn_relu_upsample(x, w3, gamma, beta, self.gmat,
                                         upsample, out_dtype)
        return jnp.transpose(x, (0, 3, 1, 2))       # NHWC -> NCHW


if __name__ == "__main__":
    key = jax.random.PRNGKey(0)
    kx, kp = jax.random.split(key)

    # Small shapes: batch=2, in_channels=16, out_channels=32 (GroupNorm(32,C)
    # needs C % 32 == 0), spatial 8x8, n_upsamples=2 -> output (2, 32, 32, 32).
    N, Cin, H, W = 2, 16, 8, 8
    Cout, n_up = 32, 2

    x = jax.random.normal(kx, (N, Cin, H, W), jnp.float32)
    model = SegmentationBlockPallas(Cin, Cout, n_upsamples=n_up, key=kp)

    y = jax.block_until_ready(model(x))
    assert y.shape == (N, Cout, H * (2 ** n_up), W * (2 ** n_up)), y.shape
    assert y.dtype == jnp.float32
    assert bool(jnp.all(jnp.isfinite(y)))
    print("KERNEL_OK")
</pallas_src>

<mosaic_0001>
module attributes {stable_mosaic.version = 11 : i64} {
  func.func @_block_kernel(%arg0: i32, %arg1: memref<1x8x8x16xf32, #tpu.memory_space<vmem>>, %arg2: memref<3x48x32xbf16, #tpu.memory_space<vmem>>, %arg3: memref<1x32xf32, #tpu.memory_space<vmem>>, %arg4: memref<1x32xf32, #tpu.memory_space<vmem>>, %arg5: memref<32x32xf32, #tpu.memory_space<vmem>>, %arg6: memref<16x8xbf16, #tpu.memory_space<vmem>>, %arg7: memref<1x8x1xf32, #tpu.memory_space<vmem>>, %arg8: memref<1x8x1xf32, #tpu.memory_space<vmem>>, %arg9: memref<1x16x512xbf16, #tpu.memory_space<vmem>>, %arg10: memref<10x10x16xf32, #tpu.memory_space<vmem>>, %arg11: memref<64x32xf32, #tpu.memory_space<vmem>>) attributes {dimension_semantics = [#tpu.dimension_semantics<parallel>], iteration_bounds = array<i64: 2>, scalar_prefetch = 0 : i64, scratch_operands = 2 : i64, tpu.core_type = #tpu.core_type<tc>, window_params = [{transform_indices = @transform_0, window_bounds = array<i64: 1, 8, 8, 16>}, {pipeline_mode = #tpu.pipeline_mode<synchronous>, transform_indices = @transform_1, window_bounds = array<i64: 3, 48, 32>}, {pipeline_mode = #tpu.pipeline_mode<synchronous>, transform_indices = @transform_2, window_bounds = array<i64: 1, 32>}, {pipeline_mode = #tpu.pipeline_mode<synchronous>, transform_indices = @transform_3, window_bounds = array<i64: 1, 32>}, {pipeline_mode = #tpu.pipeline_mode<synchronous>, transform_indices = @transform_4, window_bounds = array<i64: 32, 32>}, {pipeline_mode = #tpu.pipeline_mode<synchronous>, transform_indices = @transform_5, window_bounds = array<i64: 16, 8>}, {pipeline_mode = #tpu.pipeline_mode<synchronous>, transform_indices = @transform_6, window_bounds = array<i64: 1, 8, 1>}, {pipeline_mode = #tpu.pipeline_mode<synchronous>, transform_indices = @transform_7, window_bounds = array<i64: 1, 8, 1>}, {transform_indices = @transform_8, window_bounds = array<i64: 1, 16, 512>}]} {
    %cst = arith.constant 0.000000e+00 : f32
    %0 = vector.broadcast %cst : f32 to vector<1x10x16xf32>
    %c0 = arith.constant 0 : index
    %c0_0 = arith.constant 0 : index
    %c0_1 = arith.constant 0 : index
    %1 = vector.load %arg10[%c0, %c0_0, %c0_1] : memref<10x10x16xf32, #tpu.memory_space<vmem>>, vector<1x10x16xf32>
    tpu.vector_store %arg10[%c0, %c0_0, %c0_1], %0 {strides = array<i32>} : memref<10x10x16xf32, #tpu.memory_space<vmem>>, vector<1x10x16xf32>,
    %cst_2 = arith.constant 0.000000e+00 : f32
    %2 = vector.broadcast %cst_2 : f32 to vector<1x10x16xf32>
    %c9 = arith.constant 9 : index
    %c0_3 = arith.constant 0 : index
    %c0_4 = arith.constant 0 : index
    %3 = vector.load %arg10[%c9, %c0_3, %c0_4] : memref<10x10x16xf32, #tpu.memory_space<vmem>>, vector<1x10x16xf32>
    tpu.vector_store %arg10[%c9, %c0_3, %c0_4], %2 {strides = array<i32>} : memref<10x10x16xf32, #tpu.memory_space<vmem>>, vector<1x10x16xf32>,
    %cst_5 = arith.constant 0.000000e+00 : f32
    %4 = vector.broadcast %cst_5 : f32 to vector<8x1x16xf32>
    %c1 = arith.constant 1 : index
    %c0_6 = arith.constant 0 : index
    %c0_7 = arith.constant 0 : index
    %5 = vector.load %arg10[%c1, %c0_6, %c0_7] : memref<10x10x16xf32, #tpu.memory_space<vmem>>, vector<8x1x16xf32>
    tpu.vector_store %arg10[%c1, %c0_6, %c0_7], %4 {strides = array<i32>} : memref<10x10x16xf32, #tpu.memory_space<vmem>>, vector<8x1x16xf32>,
    %cst_8 = arith.constant 0.000000e+00 : f32
    %6 = vector.broadcast %cst_8 : f32 to vector<8x1x16xf32>
    %c1_9 = arith.constant 1 : index
    %c9_10 = arith.constant 9 : index
    %c0_11 = arith.constant 0 : index
    %7 = vector.load %arg10[%c1_9, %c9_10, %c0_11] : memref<10x10x16xf32, #tpu.memory_space<vmem>>, vector<8x1x16xf32>
    tpu.vector_store %arg10[%c1_9, %c9_10, %c0_11], %6 {strides = array<i32>} : memref<10x10x16xf32, #tpu.memory_space<vmem>>, vector<8x1x16xf32>,
    %c0_12 = arith.constant 0 : index
    %c0_13 = arith.constant 0 : index
    %c0_14 = arith.constant 0 : index
    %c0_15 = arith.constant 0 : index
    %8 = vector.load %arg1[%c0_12, %c0_13, %c0_14, %c0_15] : memref<1x8x8x16xf32, #tpu.memory_space<vmem>>, vector<1x8x8x16xf32>
    %9 = vector.shape_cast %8 : vector<1x8x8x16xf32> to vector<8x8x16xf32>
    %c1_16 = arith.constant 1 : index
    %c1_17 = arith.constant 1 : index
    %c0_18 = arith.constant 0 : index
    %10 = vector.load %arg10[%c1_16, %c1_17, %c0_18] : memref<10x10x16xf32, #tpu.memory_space<vmem>>, vector<8x8x16xf32>
    tpu.vector_store %arg10[%c1_16, %c1_17, %c0_18], %9 {strides = array<i32>} : memref<10x10x16xf32, #tpu.memory_space<vmem>>, vector<8x8x16xf32>,
    %c0_19 = arith.constant 0 : index
    %c0_20 = arith.constant 0 : index
    %c0_21 = arith.constant 0 : index
    %11 = vector.load %arg10[%c0_19, %c0_20, %c0_21] : memref<10x10x16xf32, #tpu.memory_space<vmem>>, vector<8x8x16xf32>
    %c0_22 = arith.constant 0 : index
    %c1_23 = arith.constant 1 : index
    %c0_24 = arith.constant 0 : index
    %12 = vector.load %arg10[%c0_22, %c1_23, %c0_24] : memref<10x10x16xf32, #tpu.memory_space<vmem>>, vector<8x8x16xf32>
    %c0_25 = arith.constant 0 : index
    %c2 = arith.constant 2 : index
    %c0_26 = arith.constant 0 : index
    %13 = vector.load %arg10[%c0_25, %c2, %c0_26] : memref<10x10x16xf32, #tpu.memory_space<vmem>>, vector<8x8x16xf32>
    %14 = tpu.concatenate %11, %12, %13 in 2 : vector<8x8x16xf32>, vector<8x8x16xf32>, vector<8x8x16xf32> -> vector<8x8x48xf32>
    %15 = vector.shape_cast %14 : vector<8x8x48xf32> to vector<64x48xf32>
    %16 = arith.truncf %15 : vector<64x48xf32> to vector<64x48xbf16>
    %c0_27 = arith.constant 0 : index
    %c0_28 = arith.constant 0 : index
    %c0_29 = arith.constant 0 : index
    %17 = vector.load %arg2[%c0_27, %c0_28, %c0_29] : memref<3x48x32xbf16, #tpu.memory_space<vmem>>, vector<1x48x32xbf16>
    %18 = vector.shape_cast %17 : vector<1x48x32xbf16> to vector<48x32xbf16>
    %cst_30 = arith.constant dense<0.000000e+00> : vector<64x32xf32>
    %19 = tpu.matmul %16, %18, %cst_30 {dimension_numbers = #tpu.dot_dimension_numbers<[1], [0], [0], [1], [0, 0, 1, 1], [], []>} : vector<64x48xbf16>, vector<48x32xbf16>, vector<64x32xf32> -> vector<64x32xf32>
    %c0_31 = arith.constant 0 : index
    %c0_32 = arith.constant 0 : index
    %20 = vector.load %arg11[%c0_31, %c0_32] : memref<64x32xf32, #tpu.memory_space<vmem>>, vector<64x32xf32>
    tpu.vector_store %arg11[%c0_31, %c0_32], %19 {strides = array<i32>} : memref<64x32xf32, #tpu.memory_space<vmem>>, vector<64x32xf32>,
    %c1_33 = arith.constant 1 : index
    %c0_34 = arith.constant 0 : index
    %c0_35 = arith.constant 0 : index
    %21 = vector.load %arg10[%c1_33, %c0_34, %c0_35] : memref<10x10x16xf32, #tpu.memory_space<vmem>>, vector<8x8x16xf32>
    %c1_36 = arith.constant 1 : index
    %c1_37 = arith.constant 1 : index
    %c0_38 = arith.constant 0 : index
    %22 = vector.load %arg10[%c1_36, %c1_37, %c0_38] : memref<10x10x16xf32, #tpu.memory_space<vmem>>, vector<8x8x16xf32>
    %c1_39 = arith.constant 1 : index
    %c2_40 = arith.constant 2 : index
    %c0_41 = arith.constant 0 : index
    %23 = vector.load %arg10[%c1_39, %c2_40, %c0_41] : memref<10x10x16xf32, #tpu.memory_space<vmem>>, vector<8x8x16xf32>
    %24 = tpu.concatenate %21, %22, %23 in 2 : vector<8x8x16xf32>, vector<8x8x16xf32>, vector<8x8x16xf32> -> vector<8x8x48xf32>
    %25 = vector.shape_cast %24 : vector<8x8x48xf32> to vector<64x48xf32>
    %26 = arith.truncf %25 : vector<64x48xf32> to vector<64x48xbf16>
    %c1_42 = arith.constant 1 : index
    %c0_43 = arith.constant 0 : index
    %c0_44 = arith.constant 0 : index
    %27 = vector.load %arg2[%c1_42, %c0_43, %c0_44] : memref<3x48x32xbf16, #tpu.memory_space<vmem>>, vector<1x48x32xbf16>
    %28 = vector.shape_cast %27 : vector<1x48x32xbf16> to vector<48x32xbf16>
    %cst_45 = arith.constant dense<0.000000e+00> : vector<64x32xf32>
    %29 = tpu.matmul %26, %28, %cst_45 {dimension_numbers = #tpu.dot_dimension_numbers<[1], [0], [0], [1], [0, 0, 1, 1], [], []>} : vector<64x48xbf16>, vector<48x32xbf16>, vector<64x32xf32> -> vector<64x32xf32>
    %c0_46 = arith.constant 0 : index
    %c0_47 = arith.constant 0 : index
    %30 = vector.load %arg11[%c0_46, %c0_47] : memref<64x32xf32, #tpu.memory_space<vmem>>, vector<64x32xf32>
    %31 = arith.addf %30, %29 : vector<64x32xf32>
    %c0_48 = arith.constant 0 : index
    %c0_49 = arith.constant 0 : index
    %32 = vector.load %arg11[%c0_48, %c0_49] : memref<64x32xf32, #tpu.memory_space<vmem>>, vector<64x32xf32>
    tpu.vector_store %arg11[%c0_48, %c0_49], %31 {strides = array<i32>} : memref<64x32xf32, #tpu.memory_space<vmem>>, vector<64x32xf32>,
    %c2_50 = arith.constant 2 : index
    %c0_51 = arith.constant 0 : index
    %c0_52 = arith.constant 0 : index
    %33 = vector.load %arg10[%c2_50, %c0_51, %c0_52] : memref<10x10x16xf32, #tpu.memory_space<vmem>>, vector<8x8x16xf32>
    %c2_53 = arith.constant 2 : index
    %c1_54 = arith.constant 1 : index
    %c0_55 = arith.constant 0 : index
    %34 = vector.load %arg10[%c2_53, %c1_54, %c0_55] : memref<10x10x16xf32, #tpu.memory_space<vmem>>, vector<8x8x16xf32>
    %c2_56 = arith.constant 2 : index
    %c2_57 = arith.constant 2 : index
    %c0_58 = arith.constant 0 : index
    %35 = vector.load %arg10[%c2_56, %c2_57, %c0_58] : memref<10x10x16xf32, #tpu.memory_space<vmem>>, vector<8x8x16xf32>
    %36 = tpu.concatenate %33, %34, %35 in 2 : vector<8x8x16xf32>, vector<8x8x16xf32>, vector<8x8x16xf32> -> vector<8x8x48xf32>
    %37 = vector.shape_cast %36 : vector<8x8x48xf32> to vector<64x48xf32>
    %38 = arith.truncf %37 : vector<64x48xf32> to vector<64x48xbf16>
    %c2_59 = arith.constant 2 : index
    %c0_60 = arith.constant 0 : index
    %c0_61 = arith.constant 0 : index
    %39 = vector.load %arg2[%c2_59, %c0_60, %c0_61] : memref<3x48x32xbf16, #tpu.memory_space<vmem>>, vector<1x48x32xbf16>
    %40 = vector.shape_cast %39 : vector<1x48x32xbf16> to vector<48x32xbf16>
    %cst_62 = arith.constant dense<0.000000e+00> : vector<64x32xf32>
    %41 = tpu.matmul %38, %40, %cst_62 {dimension_numbers = #tpu.dot_dimension_numbers<[1], [0], [0], [1], [0, 0, 1, 1], [], []>} : vector<64x48xbf16>, vector<48x32xbf16>, vector<64x32xf32> -> vector<64x32xf32>
    %c0_63 = arith.constant 0 : index
    %c0_64 = arith.constant 0 : index
    %42 = vector.load %arg11[%c0_63, %c0_64] : memref<64x32xf32, #tpu.memory_space<vmem>>, vector<64x32xf32>
    %43 = arith.addf %42, %41 : vector<64x32xf32>
    %c0_65 = arith.constant 0 : index
    %c0_66 = arith.constant 0 : index
    %44 = vector.load %arg11[%c0_65, %c0_66] : memref<64x32xf32, #tpu.memory_space<vmem>>, vector<64x32xf32>
    tpu.vector_store %arg11[%c0_65, %c0_66], %43 {strides = array<i32>} : memref<64x32xf32, #tpu.memory_space<vmem>>, vector<64x32xf32>,
    %c0_67 = arith.constant 0 : index
    %c0_68 = arith.constant 0 : index
    %45 = vector.load %arg11[%c0_67, %c0_68] : memref<64x32xf32, #tpu.memory_space<vmem>>, vector<64x32xf32>
    %cst_69 = arith.constant dense<0.000000e+00> : vector<32xf32>
    %46 = vector.multi_reduction <add>, %45, %cst_69 [0] : vector<64x32xf32> to vector<32xf32>
    %47 = vector.shape_cast %46 : vector<32xf32> to vector<1x32xf32>
    %48 = arith.mulf %45, %45 : vector<64x32xf32>
    %cst_70 = arith.constant dense<0.000000e+00> : vector<32xf32>
    %49 = vector.multi_reduction <add>, %48, %cst_70 [0] : vector<64x32xf32> to vector<32xf32>
    %50 = vector.shape_cast %49 : vector<32xf32> to vector<1x32xf32>
    %c0_71 = arith.constant 0 : index
    %c0_72 = arith.constant 0 : index
    %51 = vector.load %arg5[%c0_71, %c0_72] : memref<32x32xf32, #tpu.memory_space<vmem>>, vector<32x32xf32>
    %cst_73 = arith.constant dense<0.000000e+00> : vector<1x32xf32>
    %52 = tpu.matmul %47, %51, %cst_73 {dimension_numbers = #tpu.dot_dimension_numbers<[1], [0], [0], [1], [0, 0, 1, 1], [], []>} : vector<1x32xf32>, vector<32x32xf32>, vector<1x32xf32> -> vector<1x32xf32>
    %c0_74 = arith.constant 0 : index
    %c0_75 = arith.constant 0 : index
    %53 = vector.load %arg5[%c0_74, %c0_75] : memref<32x32xf32, #tpu.memory_space<vmem>>, vector<32x32xf32>
    %cst_76 = arith.constant dense<0.000000e+00> : vector<1x32xf32>
    %54 = tpu.matmul %50, %53, %cst_76 {dimension_numbers = #tpu.dot_dimension_numbers<[1], [0], [0], [1], [0, 0, 1, 1], [], []>} : vector<1x32xf32>, vector<32x32xf32>, vector<1x32xf32> -> vector<1x32xf32>
    %cst_77 = arith.constant 1.562500e-02 : f32
    %55 = vector.broadcast %cst_77 : f32 to vector<1x32xf32>
    %56 = arith.mulf %52, %55 : vector<1x32xf32>
    %cst_78 = arith.constant 1.562500e-02 : f32
    %57 = vector.broadcast %cst_78 : f32 to vector<1x32xf32>
    %58 = arith.mulf %54, %57 : vector<1x32xf32>
    %59 = arith.mulf %56, %56 : vector<1x32xf32>
    %60 = arith.subf %58, %59 : vector<1x32xf32>
    %cst_79 = arith.constant 0.000000e+00 : f32
    %61 = vector.broadcast %cst_79 : f32 to vector<1x32xf32>
    %62 = arith.maximumf %60, %61 : vector<1x32xf32>
    %cst_80 = arith.constant 9.99999974E-6 : f32
    %63 = vector.broadcast %cst_80 : f32 to vector<1x32xf32>
    %64 = arith.addf %62, %63 : vector<1x32xf32>
    %65 = math.rsqrt %64 : vector<1x32xf32>
    %66 = vector.broadcast %56 : vector<1x32xf32> to vector<64x32xf32>
    %67 = arith.subf %45, %66 : vector<64x32xf32>
    %c0_81 = arith.constant 0 : index
    %c0_82 = arith.constant 0 : index
    %68 = vector.load %arg3[%c0_81, %c0_82] : memref<1x32xf32, #tpu.memory_space<vmem>>, vector<1x32xf32>
    %69 = arith.mulf %65, %68 : vector<1x32xf32>
    %70 = vector.broadcast %69 : vector<1x32xf32> to vector<64x32xf32>
    %71 = arith.mulf %67, %70 : vector<64x32xf32>
    %c0_83 = arith.constant 0 : index
    %c0_84 = arith.constant 0 : index
    %72 = vector.load %arg4[%c0_83, %c0_84] : memref<1x32xf32, #tpu.memory_space<vmem>>, vector<1x32xf32>
    %73 = vector.broadcast %72 : vector<1x32xf32> to vector<64x32xf32>
    %74 = arith.addf %71, %73 : vector<64x32xf32>
    %cst_85 = arith.constant 0.000000e+00 : f32
    %75 = vector.broadcast %cst_85 : f32 to vector<64x32xf32>
    %76 = arith.maximumf %74, %75 : vector<64x32xf32>
    %77 = vector.shape_cast %76 : vector<64x32xf32> to vector<8x8x32xf32>
    %c0_86 = arith.constant 0 : index
    %c0_87 = arith.constant 0 : index
    %c0_88 = arith.constant 0 : index
    %78 = vector.load %arg7[%c0_86, %c0_87, %c0_88] : memref<1x8x1xf32, #tpu.memory_space<vmem>>, vector<1x8x1xf32>
    %c0_89 = arith.constant 0 : index
    %c0_90 = arith.constant 0 : index
    %c0_91 = arith.constant 0 : index
    %79 = vector.load %arg8[%c0_89, %c0_90, %c0_91] : memref<1x8x1xf32, #tpu.memory_space<vmem>>, vector<1x8x1xf32>
    %80 = vector.extract_strided_slice %77 {offsets = [0, 0, 0], sizes = [8, 1, 32], strides = [1, 1, 1]} : vector<8x8x32xf32> to vector<8x1x32xf32>
    %81 = vector.extract_strided_slice %77 {offsets = [0, 0, 0], sizes = [8, 7, 32], strides = [1, 1, 1]} : vector<8x8x32xf32> to vector<8x7x32xf32>
    %82 = tpu.concatenate %80, %81 in 1 : vector<8x1x32xf32>, vector<8x7x32xf32> -> vector<8x8x32xf32>
    %83 = vector.extract_strided_slice %77 {offsets = [0, 1, 0], sizes = [8, 7, 32], strides = [1, 1, 1]} : vector<8x8x32xf32> to vector<8x7x32xf32>
    %84 = vector.extract_strided_slice %77 {offsets = [0, 7, 0], sizes = [8, 1, 32], strides = [1, 1, 1]} : vector<8x8x32xf32> to vector<8x1x32xf32>
    %85 = tpu.concatenate %83, %84 in 1 : vector<8x7x32xf32>, vector<8x1x32xf32> -> vector<8x8x32xf32>
    %cst_92 = arith.constant 1.000000e+00 : f32
    %86 = vector.broadcast %cst_92 : f32 to vector<1x8x1xf32>
    %87 = arith.subf %86, %78 : vector<1x8x1xf32>
    %88 = vector.broadcast %87 : vector<1x8x1xf32> to vector<8x8x32xf32>
    %89 = arith.mulf %88, %82 : vector<8x8x32xf32>
    %90 = vector.broadcast %78 : vector<1x8x1xf32> to vector<8x8x32xf32>
    %91 = arith.mulf %90, %77 : vector<8x8x32xf32>
    %92 = arith.addf %89, %91 : vector<8x8x32xf32>
    %cst_93 = arith.constant 1.000000e+00 : f32
    %93 = vector.broadcast %cst_93 : f32 to vector<1x8x1xf32>
    %94 = arith.subf %93, %79 : vector<1x8x1xf32>
    %95 = vector.broadcast %94 : vector<1x8x1xf32> to vector<8x8x32xf32>
    %96 = arith.mulf %95, %77 : vector<8x8x32xf32>
    %97 = vector.broadcast %79 : vector<1x8x1xf32> to vector<8x8x32xf32>
    %98 = arith.mulf %97, %85 : vector<8x8x32xf32>
    %99 = arith.addf %96, %98 : vector<8x8x32xf32>
    %100 = tpu.concatenate %92, %99 in 2 : vector<8x8x32xf32>, vector<8x8x32xf32> -> vector<8x8x64xf32>
    %101 = vector.shape_cast %100 : vector<8x8x64xf32> to vector<8x512xf32>
    %c0_94 = arith.constant 0 : index
    %c0_95 = arith.constant 0 : index
    %102 = vector.load %arg6[%c0_94, %c0_95] : memref<16x8xbf16, #tpu.memory_space<vmem>>, vector<16x8xbf16>
    %103 = arith.truncf %101 : vector<8x512xf32> to vector<8x512xbf16>
    %cst_96 = arith.constant dense<0.000000e+00> : vector<16x512xf32>
    %104 = tpu.matmul %102, %103, %cst_96 {dimension_numbers = #tpu.dot_dimension_numbers<[1], [0], [0], [1], [0, 0, 1, 1], [], []>} : vector<16x8xbf16>, vector<8x512xbf16>, vector<16x512xf32> -> vector<16x512xf32>
    %105 = vector.shape_cast %104 : vector<16x512xf32> to vector<1x16x512xf32>
    %106 = arith.truncf %105 : vector<1x16x512xf32> to vector<1x16x512xbf16>
    %c0_97 = arith.constant 0 : index
    %c0_98 = arith.constant 0 : index
    %c0_99 = arith.constant 0 : index
    %107 = vector.load %arg9[%c0_97, %c0_98, %c0_99] : memref<1x16x512xbf16, #tpu.memory_space<vmem>>, vector<1x16x512xbf16>
    tpu.vector_store %arg9[%c0_97, %c0_98, %c0_99], %106 {strides = array<i32>} : memref<1x16x512xbf16, #tpu.memory_space<vmem>>, vector<1x16x512xbf16>,
    return
  }
  func.func @transform_0(%arg0: i32) -> (i32, i32, i32, i32) {
    %c0_i32 = arith.constant 0 : i32
    %c0_i32_0 = arith.constant 0 : i32
    %c0_i32_1 = arith.constant 0 : i32
    %c0_i32_2 = arith.constant 0 : i32
    return %arg0, %c0_i32, %c0_i32_0, %c0_i32_1 : i32, i32, i32, i32
  }
  func.func @transform_1(%arg0: i32) -> (i32, i32, i32) {
    %c0_i32 = arith.constant 0 : i32
    %c0_i32_0 = arith.constant 0 : i32
    %c0_i32_1 = arith.constant 0 : i32
    %c0_i32_2 = arith.constant 0 : i32
    return %c0_i32, %c0_i32_0, %c0_i32_1 : i32, i32, i32
  }
  func.func @transform_2(%arg0: i32) -> (i32, i32) {
    %c0_i32 = arith.constant 0 : i32
    %c0_i32_0 = arith.constant 0 : i32
    %c0_i32_1 = arith.constant 0 : i32
    return %c0_i32, %c0_i32_0 : i32, i32
  }
  func.func @transform_3(%arg0: i32) -> (i32, i32) {
    %c0_i32 = arith.constant 0 : i32
    %c0_i32_0 = arith.constant 0 : i32
    %c0_i32_1 = arith.constant 0 : i32
    return %c0_i32, %c0_i32_0 : i32, i32
  }
  func.func @transform_4(%arg0: i32) -> (i32, i32) {
    %c0_i32 = arith.constant 0 : i32
    %c0_i32_0 = arith.constant 0 : i32
    %c0_i32_1 = arith.constant 0 : i32
    return %c0_i32, %c0_i32_0 : i32, i32
  }
  func.func @transform_5(%arg0: i32) -> (i32, i32) {
    %c0_i32 = arith.constant 0 : i32
    %c0_i32_0 = arith.constant 0 : i32
    %c0_i32_1 = arith.constant 0 : i32
    return %c0_i32, %c0_i32_0 : i32, i32
  }
  func.func @transform_6(%arg0: i32) -> (i32, i32, i32) {
    %c0_i32 = arith.constant 0 : i32
    %c0_i32_0 = arith.constant 0 : i32
    %c0_i32_1 = arith.constant 0 : i32
    %c0_i32_2 = arith.constant 0 : i32
    return %c0_i32, %c0_i32_0, %c0_i32_1 : i32, i32, i32
  }
  func.func @transform_7(%arg0: i32) -> (i32, i32, i32) {
    %c0_i32 = arith.constant 0 : i32
    %c0_i32_0 = arith.constant 0 : i32
    %c0_i32_1 = arith.constant 0 : i32
    %c0_i32_2 = arith.constant 0 : i32
    return %c0_i32, %c0_i32_0, %c0_i32_1 : i32, i32, i32
  }
  func.func @transform_8(%arg0: i32) -> (i32, i32, i32) {
    %c0_i32 = arith.constant 0 : i32
    %c0_i32_0 = arith.constant 0 : i32
    %c0_i32_1 = arith.constant 0 : i32
    return %arg0, %c0_i32, %c0_i32_0 : i32, i32, i32
  }
}

</mosaic_0001>

<bundles_post_ra>
// kernel: tpu_custom_call.1
= control target key start
LH: loop header
LB: loop body
LE: loop exit
PB: predicated region body
PF: predicated region fallthrough
CT: control target
= control target key end

     0   :  { %13 = vsyncpa [#allocation5], 0  ;;  %s2515_s0 = inlined_call_operand.vmem [shape: f32[2,8,8,16], index: 0, kind: input, shape index: {}]   ;;  %s2516_s1 = inlined_call_operand.vmem [shape: bf16[3,48,32], index: 1, kind: input, shape index: {}]   ;;  %s2517_s2 = inlined_call_operand.vmem [shape: f32[1,32], index: 2, kind: input, shape index: {}]   ;;  %s2518_s3 = inlined_call_operand.vmem [shape: f32[1,32], index: 3, kind: input, shape index: {}]   ;;  %s2519_s4 = inlined_call_operand.hbm [shape: f32[32,32], index: 4, kind: input, shape index: {}]   ;;  %s2520_s5 = inlined_call_operand.vmem [shape: bf16[16,8], index: 5, kind: input, shape index: {}]   ;;  %s2521_s6 = inlined_call_operand.vmem [shape: f32[1,8,1], index: 6, kind: input, shape index: {}]   ;;  %s2522_s7 = inlined_call_operand.vmem [shape: f32[1,8,1], index: 7, kind: input, shape index: {}]   ;;  %s2523_s8 = inlined_call_operand.hbm [shape: bf16[2,16,512], index: 8, kind: output, shape index: {}]  }
   0x1   :  { %14 = vsyncpa [#allocation6], 0 }
   0x2   :  { %16 = vsyncpa [#allocation6 + $0x1], 0  ;;  %s2049_s27 = smov 0   ;;  %s2051_s28 = smov 0  }
   0x3   :  { %s2053_s29 = smov 0   ;;  %s2055_s30 = smov 0  }
   0x4 LB: > { %s2070_s9 = sadd.s32 4294967295, %s1991_s30   ;;  %s1593_s10 = sadd.s32 4294967294, %s1991_s30   ;;  %s1991_s30 = sphi %s2055_s30, %s2529_s30   ;;  %s1987_s29 = sphi %s2053_s29, %s2528_s29   ;;  %s1983_s28 = sphi %s2051_s28, %s2527_s28   ;;  %s1979_s27 = sphi %s2049_s27, %s2526_s27  }
   0x5   : > { %s2074_s11 = sadd.s32 1, %s1991_s30   ;;  %s202_s12 = sadd.s32 1, %s1987_s29 }
   0x6   : > { %s199_s13 = ssub.s32 %s1991_s30, %s2074_s11  ;;  %p212_p0 = scmp.ne.s32.totalorder %s1987_s29, %s1983_s28 }
   0x7   : > { %p200_p1 = scmp.eq.s32.totalorder %s199_s13, 0  ;;  %p213_p2 = scmp.eq.s32.totalorder %s2070_s9, 1 }
   0x8   : > { %p218_p3 = scmp.ne.s32.totalorder %s1983_s28, %s1979_s27  ;;  %p219_p4 = scmp.eq.s32.totalorder %s1593_s10, 1 }
   0x9   : > { %s2085_s14 = scalar_select %p200_p1, %s1987_s29, %s202_s12  }
   0xa   : > { %p2087_p5 = por %p213_p2, %p212_p0  ;;  %p2091_p6 = por %p219_p4, %p218_p3 }
   0xb   : > { %p1594_p7 = scmp.ge.s32.totalorder %s1991_s30, 1  ;;  %p226_p8 = scmp.lt.s32.totalorder %s1991_s30, 3 }
   0xc   : > { %p1703_p9 = scmp.eq.s32.totalorder %s2070_s9, 0  ;;  %s246_s19 = sshll.u32 %s2519_s4, 4  ;;  %s247_s19 = int_to_ptr.hbm [resolvable:$true] %s246_s19 }
   0xd   : > { %p227_p10 = pnand %p1594_p7, %p226_p8  ;;  %s1993_s20 = smov [#allocation4]  }
   0xe   : > { %s248_s21 = sshll.u32 %s1993_s20, 4  ;;  %s1994_s22 = smov 128   ;;  %s249_s21 = int_to_ptr.vmem [resolvable:$true] %s248_s21 }
   0xf   : > { %p1695_p11 = pneg %p227_p10  ;;  %s1995_s23 = smov 8  }
  0x10   : > { %281 = sbr.rel (%p227_p10) target bundleno = 1019 (0x3fb), region = 52 }
  0x11   : > { %p1696_p12 = pnand %p1703_p9, %p1695_p11 }
  0x13   : > { %1698 = dma.hbm_to_vmem [thread:$0]  (!%p1696_p12), %s247_s19, 512, %s249_s21, [#allocation5], %s1994_s22, %s1994_s22, %s1995_s23  }
  0x15   : > { %1970 = dma.done.wait (%p1703_p9), [#allocation5], 512  }
  0x16   : > { %1972 = vsyncadd (%p1703_p9), [#allocation5], 4294966784  ;;  %p316_p13 = scmp.lt.s32.totalorder %s2070_s9, 1  ;;  %vm322_vm0 = vcmask 130048   ;;  %v1996_v0 = vmov 0.0   ;;  %vm324_vm1 = vcmask 123904  }
  0x17   : > { %323 = vst.msk [vmem:[#allocation2] sm:$0xff] %vm322_vm0, %v1996_v0  ;;  %vm330_vm2 = vcmask 122880   ;;  %s1997_s13 = smov 16   ;;  %s1998_s17 = smov 32   ;;  %v1686_v47 = vld [vmem:[%s2516_s1 + $0x40] sm:$0xff]  ;;  %v1680_v48 = vld [vmem:[%s2516_s1 + $0x10] sm:$0xff] }
  0x18   : > { %s317_s24 = scalar_select %p316_p13, %s2070_s9, 1  ;;  %325 = vst.msk [vmem:[#allocation2 + $0x8] sm:$0x3] %vm324_vm1, %v1996_v0  ;;  %895 = vmatpush.bf16.msra.mxu2 %v1686_v47  ;;  %v1683_v49 = vld [vmem:[%s2516_s1 + $0x28] sm:$0xff]  ;;  %v1685_v50 = vld [vmem:[%s2516_s1 + $0x38] sm:$0xff]  ;;  %514 = vmatpush.bf16.msra.mxu0 %v1680_v48  ;;  %v1682_v52 = vld [vmem:[%s2516_s1 + $0x20] sm:$0xff] }
  0x19   : > { %327 = vst.msk [vmem:[#allocation2 + $0x90] sm:$0xff] %vm322_vm0, %v1996_v0  ;;  %696 = vmatpush.bf16.msra.mxu1 %v1683_v49  ;;  %v1679_v51 = vld [vmem:[%s2516_s1 + $0x8] sm:$0xff]  ;;  %v1684_v53 = vld [vmem:[%s2516_s1 + $0x30] sm:$0xff]  ;;  %v1678_v54 = vld [vmem:[%s2516_s1] sm:$0xff]  ;;  %vm459_vm3 = vcmask 261120   ;;  %vm496_vm4 = vcmask 392192  }
  0x1a   : > { %s1677_s25 = sshll.u32 %s317_s24, 6  ;;  %328 = vst.msk [vmem:[#allocation2 + $0x98] sm:$0x3] %vm324_vm1, %v1996_v0  ;;  %v1681_v55 = vld [vmem:[%s2516_s1 + $0x18] sm:$0xff]  ;;  %vm1158_vm8 = vcmask 1046528   ;;  %vm1133_vm9 = vcmask 1040384  }
  0x1b   : > { %s2114_s12 = scalar_lea.vmem %s2515_s0, %s1677_s25  ;;  %339 = vst.msk [vmem:[#allocation2 + $0x19] sm:$0x1] %vm330_vm2, %v1996_v0  ;;  %vm1278_vm10 = vcmask 1047556   ;;  %vm1406_vm11 = vcmask 523264   ;;  %vm1426_vm12 = vcmask 1043456   ;;  %vm1422_vm13 = vcmask 64512  }
  0x1c   : > { %340 = vst.msk [vmem:[#allocation2 + $0x29] sm:$0x1] %vm330_vm2, %v1996_v0  ;;  %v347_v1 = vld [vmem:[%s2114_s12] sm:$0xff]  ;;  %v348_v2 = vld [vmem:[%s2114_s12 + $0x8] sm:$0xff]  ;;  %v349_v11 = vld [vmem:[%s2114_s12 + $0x10] sm:$0xff]  ;;  %896 = vmatpush.bf16.msra.mxu2 %v1685_v50  ;;  %515 = vmatpush.bf16.msra.mxu0 %v1679_v51  ;;  %s313_s24 = sand.u32 1, %s1983_s28  }
  0x1d   : > { %331 = vst.msk [vmem:[#allocation2 + $0x10] sm:$0x1] %vm330_vm2, %v1996_v0  ;;  %v350_v12 = vld [vmem:[%s2114_s12 + $0x18] sm:$0xff]  ;;  %v351_v14 = vld [vmem:[%s2114_s12 + $0x20] sm:$0xff]  ;;  %v352_v16 = vld [vmem:[%s2114_s12 + $0x28] sm:$0xff]  ;;  %697 = vmatpush.bf16.msra.mxu1 %v1682_v52  ;;  %s1599_s25 = sshll.u32 %s313_s24, 5 }
  0x1e   : > { %355 = vst.msk [vmem:[#allocation2 + $0x11] sm:$0xff] %vm322_vm0, %v347_v1  ;;  %v353_v17 = vld [vmem:[%s2114_s12 + $0x30] sm:$0xff]  ;;  %v354_v22 = vld [vmem:[%s2114_s12 + $0x38] sm:$0xff]  ;;  %s315_s26 = scalar_lea.vmem [#allocation7], %s1599_s25  ;;  %s1688_s10 = sshll.u32 %s2070_s9, 5 }
  0x1f   : > { %356 = vst.msk [vmem:[#allocation2 + $0x21] sm:$0xff] %vm322_vm0, %v348_v2  ;;  %v371_v3 = vld [vmem:[#allocation2 + $0x1] sm:$0xff]  ;;  %s1515_s19 = scalar_lea.hbm %s2523_s8, %s1688_s10  ;;  %s1516_s20 = sshll.u32 %s315_s26, 4  ;;  %s1517_s20 = int_to_ptr.vmem [resolvable:$true] %s1516_s20 }
  0x20   : > { %332 = vst.msk [vmem:[#allocation2 + $0x20] sm:$0x1] %vm330_vm2, %v1996_v0  ;;  %v379_v9 = vld [vmem:[#allocation2 + $0x2] sm:$0xff]  ;;  %897 = vmatpush.bf16.msra.mxu2 %v1684_v53  ;;  %516 = vmatpush.bf16.msra.mxu0 %v1678_v54  ;;  %s1518_s21 = sshll.u32 %s1515_s19, 4  ;;  %s1945_s12 = scalar_lea.hbm %s2523_s8, 64  ;;  %s1519_s21 = int_to_ptr.hbm [resolvable:$true] %s1518_s21 }
  0x21   : > { %333 = vst.msk [vmem:[#allocation2 + $0x30] sm:$0x1] %vm330_vm2, %v1996_v0  ;;  %v760_v41 = vld [vmem:[#allocation2 + $0x91] sm:$0xff]  ;;  %698 = vmatpush.bf16.msra.mxu1 %v1681_v55  ;;  %s1939_s22 = sshra.s32 %s1519_s21, 4  ;;  %s1940_s22 = int_to_ptr.hbm [resolvable:$true] %s1939_s22 }
  0x22   : > { %334 = vst.msk [vmem:[#allocation2 + $0x40] sm:$0x1] %vm330_vm2, %v1996_v0  ;;  %v768_v45 = vld [vmem:[#allocation2 + $0x92] sm:$0xff]  ;;  %s1941_s23 = scalar_lea.hbm %s1940_s22, 32  ;;  %p1946_p3 = scmp.lt.s32.totalorder %s1940_s22, %s2523_s8 }
  0x23   : > { %335 = vst.msk [vmem:[#allocation2 + $0x50] sm:$0x1] %vm330_vm2, %v1996_v0  ;;  %p1942_p0 = scmp.ne.s32.totalorder %s1940_s22, %s1941_s23  ;;  %p1947_p4 = scmp.lt.s32.totalorder %s1945_s12, %s1941_s23 }
  0x24   : > { %336 = vst.msk [vmem:[#allocation2 + $0x60] sm:$0x1] %vm330_vm2, %v1996_v0 }
  0x25   : > { %v554_v4 = vld [vmem:[#allocation2 + $0x11] sm:$0xff]  ;;  %337 = vst.msk [vmem:[#allocation2 + $0x70] sm:$0x1] %vm330_vm2, %v1996_v0  ;;  %p1943_p1 = pnand %p1942_p0, %p2087_p5  ;;  %p1948_p7 = por %p1947_p4, %p1946_p3 }
  0x26   : > { %v555_v5 = vld [vmem:[#allocation2 + $0x21] sm:$0xff]  ;;  %v1749_v6 = vpack.i.bf16 %v554_v4, %v371_v3  ;;  %338 = vst.msk [vmem:[#allocation2 + $0x80] sm:$0x1] %vm330_vm2, %v1996_v0  ;;  %v562_v8 = vld [vmem:[#allocation2 + $0x12] sm:$0xff] }
  0x27   : > { %v1759_v7 = vpack.i.bf16 %v555_v5, %v554_v4  ;;  %341 = vst.msk [vmem:[#allocation2 + $0x39] sm:$0x1] %vm330_vm2, %v1996_v0  ;;  %v563_v10 = vld [vmem:[#allocation2 + $0x22] sm:$0xff]  ;;  %v1754_v13 = vpack.i.bf16 %v562_v8, %v379_v9  ;;  %p1944_p2 = pneg %p1943_p1 }
  0x28   : > { %1750 = vrot.lane.b32.xlu0 %v1749_v6, %s1997_s13  ;;  %342 = vst.msk [vmem:[#allocation2 + $0x49] sm:$0x1] %vm330_vm2, %v1996_v0  ;;  %v1764_v15 = vpack.i.bf16 %v563_v10, %v562_v8  ;;  %v745_v59 = vld [vmem:[#allocation2 + $0x20] sm:$0xff] }
  0x29   : > { %1760 = vrot.lane.b32.xlu1 %v1759_v7, %s1997_s13  ;;  %343 = vst.msk [vmem:[#allocation2 + $0x59] sm:$0x1] %vm330_vm2, %v1996_v0  ;;  %p1949_p8 = pnand %p1948_p7, %p1944_p2 }
  0x2a   : > { %344 = vst.msk [vmem:[#allocation2 + $0x69] sm:$0x1] %vm330_vm2, %v1996_v0 }
  0x2b   : > { %345 = vst.msk [vmem:[#allocation2 + $0x79] sm:$0x1] %vm330_vm2, %v1996_v0 }
  0x2c   : > { %346 = vst.msk [vmem:[#allocation2 + $0x89] sm:$0x1] %vm330_vm2, %v1996_v0 }
  0x2d   : > { %357 = vst.msk [vmem:[#allocation2 + $0x31] sm:$0xff] %vm322_vm0, %v349_v11  ;;  %v546_v11 = vld [vmem:[#allocation2 + $0x10] sm:$0xff] }
  0x2e   : > { %358 = vst.msk [vmem:[#allocation2 + $0x41] sm:$0xff] %vm322_vm0, %v350_v12  ;;  %v363_v12 = vld [vmem:[#allocation2] sm:$0xff] }
  0x2f   : > { %359 = vst.msk [vmem:[#allocation2 + $0x51] sm:$0xff] %vm322_vm0, %v351_v14 }
  0x30   : > { %1755 = vrot.lane.b32.xlu0 %v1754_v13, %s1998_s17  ;;  %360 = vst.msk [vmem:[#allocation2 + $0x61] sm:$0xff] %vm322_vm0, %v352_v16 }
  0x31   : > { %1765 = vrot.lane.b32.xlu1 %v1764_v15, %s1998_s17  ;;  %361 = vst.msk [vmem:[#allocation2 + $0x71] sm:$0xff] %vm322_vm0, %v353_v17 }
  0x32   : > { %362 = vst.msk [vmem:[#allocation2 + $0x81] sm:$0xff] %vm322_vm0, %v354_v22 }
  0x34   : > { %v382_v18 = vld [vmem:[#allocation2 + $0x32] sm:$0xff] }
  0x35   : > { %v374_v19 = vld [vmem:[#allocation2 + $0x31] sm:$0xff]  ;;  %v1784_v20 = vpack.i.bf16 %v382_v18, %v563_v10  ;;  %v565_v23 = vld [vmem:[#allocation2 + $0x42] sm:$0xff] }
  0x36   : > { %v1779_v21 = vpack.i.bf16 %v374_v19, %v555_v5  ;;  %v755_v24 = vld [vmem:[#allocation2 + $0x41] sm:$0xff]  ;;  %v756_v25 = vld [vmem:[#allocation2 + $0x51] sm:$0xff]  ;;  %v1794_v26 = vpack.i.bf16 %v565_v23, %v382_v18 }
  0x37   : > { %v1799_v27 = vpack.i.bf16 %v756_v25, %v755_v24  ;;  %v384_v28 = vld [vmem:[#allocation2 + $0x52] sm:$0xff]  ;;  %v1789_v29 = vpack.i.bf16 %v755_v24, %v374_v19  ;;  %v567_v31 = vld [vmem:[#allocation2 + $0x62] sm:$0xff] }
  0x38   : > { %1770 = vrot.lane.b32.xlu2 %v1779_v21, %s1997_s13  ;;  %1780 = vrot.lane.b32.xlu0 %v1779_v21, %s1997_s13  ;;  %v1814_v30 = vpack.i.bf16 %v384_v28, %v565_v23  ;;  %v757_v32 = vld [vmem:[#allocation2 + $0x61] sm:$0xff]  ;;  %v758_v33 = vld [vmem:[#allocation2 + $0x71] sm:$0xff]  ;;  %v1824_v34 = vpack.i.bf16 %v567_v31, %v384_v28 }
  0x39   : > { %1785 = vrot.lane.b32.xlu1 %v1784_v20, %s1998_s17  ;;  %v1829_v35 = vpack.i.bf16 %v758_v33, %v757_v32  ;;  %v386_v36 = vld [vmem:[#allocation2 + $0x72] sm:$0xff]  ;;  %v1819_v37 = vpack.i.bf16 %v757_v32, %v756_v25  ;;  %v569_v39 = vld [vmem:[#allocation2 + $0x82] sm:$0xff] }
  0x3a   : > { %v1844_v38 = vpack.i.bf16 %v386_v36, %v567_v31  ;;  %v759_v40 = vld [vmem:[#allocation2 + $0x81] sm:$0xff]  ;;  %v1854_v42 = vpack.i.bf16 %v569_v39, %v386_v36  ;;  %v1864_v46 = vpack.i.bf16 %v768_v45, %v569_v39  ;;  %v746_v60 = vld [vmem:[#allocation2 + $0x30] sm:$0xff] }
  0x3b   : > { %v1859_v43 = vpack.i.bf16 %v760_v41, %v759_v40  ;;  %v1849_v44 = vpack.i.bf16 %v759_v40, %v758_v33  ;;  %v549_v41 = vld [vmem:[#allocation2 + $0x40] sm:$0xff]  ;;  %v748_v48 = vld [vmem:[#allocation2 + $0x50] sm:$0xff] }
  0x40   : > { %1775 = vrot.lane.b32.xlu2 %v1784_v20, %s1998_s17  ;;  %1795 = vrot.lane.b32.xlu0 %v1794_v26, %s1998_s17 }
  0x41   : > { %1800 = vrot.lane.b32.xlu1 %v1799_v27, %s1997_s13 }
  0x48   : > { %1790 = vrot.lane.b32.xlu2 %v1789_v29, %s1997_s13  ;;  %1810 = vrot.lane.b32.xlu0 %v1799_v27, %s1997_s13 }
  0x49   : > { %1815 = vrot.lane.b32.xlu1 %v1814_v30, %s1998_s17 }
  0x50   : > { %1805 = vrot.lane.b32.xlu2 %v1814_v30, %s1998_s17  ;;  %1825 = vrot.lane.b32.xlu0 %v1824_v34, %s1998_s17 }
  0x51   : > { %1830 = vrot.lane.b32.xlu1 %v1829_v35, %s1997_s13 }
  0x58   : > { %1820 = vrot.lane.b32.xlu2 %v1819_v37, %s1997_s13  ;;  %1840 = vrot.lane.b32.xlu0 %v1829_v35, %s1997_s13 }
  0x59   : > { %1845 = vrot.lane.b32.xlu1 %v1844_v38, %s1998_s17 }
  0x60   : > { %1835 = vrot.lane.b32.xlu2 %v1844_v38, %s1998_s17  ;;  %1855 = vrot.lane.b32.xlu0 %v1854_v42, %s1998_s17 }
  0x61   : > { %1860 = vrot.lane.b32.xlu1 %v1859_v43, %s1997_s13 }
  0x68   : > { %1850 = vrot.lane.b32.xlu2 %v1849_v44, %s1997_s13 }
  0x70   : > { %1865 = vrot.lane.b32.xlu2 %v1864_v46, %s1998_s17 }
  0x92   : > { %v1771_v56 = vpop.permute.xlu2 %1770 }
  0x93   : > { %v1773_v57 = vunpack.i.h.bf16 %v1771_v56  ;;  %v1772_v58 = vunpack.i.l.bf16 %v1771_v56 }
  0x95   : > { %v833_v61 = vsel %vm322_vm0, %v745_v59, %v1772_v58  ;;  %v834_v62 = vsel %vm322_vm0, %v746_v60, %v1773_v57 }
  0x9a   : > { %v1776_v63 = vpop.permute.xlu2 %1775  ;;  %v1751_v0 = vpop.permute.xlu0 %1750 }
  0x9b   : > { %v1778_v1 = vunpack.i.h.bf16 %v1776_v63  ;;  %v1777_v2 = vunpack.i.l.bf16 %v1776_v63  ;;  %v1761_v3 = vpop.permute.xlu1 %1760  ;;  %v1753_v9 = vunpack.i.h.bf16 %v1751_v0  ;;  %v1752_v10 = vunpack.i.l.bf16 %v1751_v0 }
  0x9c   : > { %v1763_v7 = vunpack.i.h.bf16 %v1761_v3  ;;  %v1762_v8 = vunpack.i.l.bf16 %v1761_v3 }
  0x9d   : > { %v841_v4 = vsel %vm459_vm3, %v833_v61, %v1777_v2  ;;  %v842_v5 = vsel %vm459_vm3, %v834_v62, %v1778_v1  ;;  %v452_v20 = vsel %vm322_vm0, %v546_v11, %v1753_v9  ;;  %v451_v21 = vsel %vm322_vm0, %v363_v12, %v1752_v10  ;;  %v551_v12 = vld [vmem:[#allocation2 + $0x60] sm:$0xff] }
  0x9e   : > { %v849_v6 = vpack.c.bf16 %v842_v5, %v841_v4  ;;  %v634_v15 = vsel %vm322_vm0, %v546_v11, %v1762_v8  ;;  %v635_v16 = vsel %vm322_vm0, %v745_v59, %v1763_v7 }
  0xa0   : > { %1658 = vmatmul.msk.bf16.vlgmr.msra.gmra.mxu2 %vm496_vm4, %v849_v6 }
  0xa2   : > { %v1791_v13 = vpop.permute.xlu2 %1790  ;;  %v1756_v14 = vpop.permute.xlu0 %1755 }
  0xa3   : > { %v1766_v17 = vpop.permute.xlu1 %1765  ;;  %v1758_v18 = vunpack.i.h.bf16 %v1756_v14  ;;  %v1757_v19 = vunpack.i.l.bf16 %v1756_v14  ;;  %v1793_v39 = vunpack.i.h.bf16 %v1791_v13  ;;  %v1792_v40 = vunpack.i.l.bf16 %v1791_v13 }
  0xa4   : > { %v1768_v22 = vunpack.i.h.bf16 %v1766_v17  ;;  %v1767_v23 = vunpack.i.l.bf16 %v1766_v17 }
  0xa5   : > { %v460_v24 = vsel %vm459_vm3, %v451_v21, %v1757_v19  ;;  %v461_v25 = vsel %vm459_vm3, %v452_v20, %v1758_v18  ;;  %v636_v44 = vsel %vm322_vm0, %v746_v60, %v1792_v40  ;;  %v637_v45 = vsel %vm322_vm0, %v549_v41, %v1793_v39  ;;  %v750_v19 = vld [vmem:[#allocation2 + $0x70] sm:$0xff] }
  0xa6   : > { %v468_v26 = vpack.c.bf16 %v461_v25, %v460_v24  ;;  %v642_v27 = vsel %vm459_vm3, %v634_v15, %v1767_v23  ;;  %v643_v28 = vsel %vm459_vm3, %v635_v16, %v1768_v22 }
  0xa7   : > { %v650_v29 = vpack.c.bf16 %v643_v28, %v642_v27 }
  0xa8   : > { %1614 = vmatmul.msk.bf16.vlgmr.msra.gmra.mxu0 %vm496_vm4, %v468_v26 }
  0xa9   : > { %1636 = vmatmul.msk.bf16.vlgmr.msra.gmra.mxu1 %vm496_vm4, %v650_v29 }
  0xaa   : > { %v1781_v30 = vpop.permute.xlu0 %1780  ;;  %v1806_v31 = vpop.permute.xlu2 %1805 }
  0xab   : > { %v1786_v32 = vpop.permute.xlu1 %1785  ;;  %v1783_v33 = vunpack.i.h.bf16 %v1781_v30  ;;  %v1782_v34 = vunpack.i.l.bf16 %v1781_v30  ;;  %v1808_v51 = vunpack.i.h.bf16 %v1806_v31  ;;  %v1807_v52 = vunpack.i.l.bf16 %v1806_v31 }
  0xac   : > { %v1788_v35 = vunpack.i.h.bf16 %v1786_v32  ;;  %v1787_v36 = vunpack.i.l.bf16 %v1786_v32 }
  0xad   : > { %v454_v37 = vsel %vm322_vm0, %v746_v60, %v1783_v33  ;;  %v453_v38 = vsel %vm322_vm0, %v745_v59, %v1782_v34 }
  0xae   : > { %v462_v42 = vsel %vm459_vm3, %v453_v38, %v1787_v36  ;;  %v463_v43 = vsel %vm459_vm3, %v454_v37, %v1788_v35 }
  0xaf   : > { %v469_v55 = vpack.c.bf16 %v463_v43, %v462_v42 }
  0xb2   : > { %v1796_v46 = vpop.permute.xlu0 %1795  ;;  %v1821_v56 = vpop.permute.xlu2 %1820 }
  0xb3   : > { %v1801_v47 = vpop.permute.xlu1 %1800  ;;  %v1798_v49 = vunpack.i.h.bf16 %v1796_v46  ;;  %v1797_v50 = vunpack.i.l.bf16 %v1796_v46  ;;  %v1823_v9 = vunpack.i.h.bf16 %v1821_v56  ;;  %v1822_v10 = vunpack.i.l.bf16 %v1821_v56  ;;  %v553_v46 = vld [vmem:[#allocation2 + $0x80] sm:$0xff]  ;;  %v752_v56 = vld [vmem:[#allocation2 + $0x90] sm:$0xff] }
  0xb4   : > { %v1803_v53 = vunpack.i.h.bf16 %v1801_v47  ;;  %v1802_v54 = vunpack.i.l.bf16 %v1801_v47 }
  0xb5   : > { %v644_v57 = vsel %vm459_vm3, %v636_v44, %v1797_v50  ;;  %v645_v58 = vsel %vm459_vm3, %v637_v45, %v1798_v49  ;;  %v638_v15 = vsel %vm322_vm0, %v748_v48, %v1822_v10  ;;  %v639_v16 = vsel %vm322_vm0, %v551_v12, %v1823_v9 }
  0xb6   : > { %v835_v59 = vsel %vm322_vm0, %v549_v41, %v1802_v54  ;;  %v836_v60 = vsel %vm322_vm0, %v748_v48, %v1803_v53  ;;  %v651_v61 = vpack.c.bf16 %v645_v58, %v644_v57 }
  0xb7   : > { %v843_v62 = vsel %vm459_vm3, %v835_v59, %v1807_v52  ;;  %v844_v63 = vsel %vm459_vm3, %v836_v60, %v1808_v51 }
  0xb8   : > { %1615 = vmatmul.msk.bf16.gmra.mxu0 %vm496_vm4, %v469_v55  ;;  %v850_v0 = vpack.c.bf16 %v844_v63, %v843_v62 }
  0xb9   : > { %1637 = vmatmul.msk.bf16.gmra.mxu1 %vm496_vm4, %v651_v61 }
  0xba   : > { %1659 = vmatmul.msk.bf16.gmra.mxu2 %vm496_vm4, %v850_v0  ;;  %v1811_v1 = vpop.permute.xlu0 %1810  ;;  %v1836_v11 = vpop.permute.xlu2 %1835 }
  0xbb   : > { %v1816_v2 = vpop.permute.xlu1 %1815  ;;  %v1813_v3 = vunpack.i.h.bf16 %v1811_v1  ;;  %v1812_v4 = vunpack.i.l.bf16 %v1811_v1  ;;  %v1838_v22 = vunpack.i.h.bf16 %v1836_v11  ;;  %v1837_v23 = vunpack.i.l.bf16 %v1836_v11 }
  0xbc   : > { %v1818_v5 = vunpack.i.h.bf16 %v1816_v2  ;;  %v1817_v6 = vunpack.i.l.bf16 %v1816_v2 }
  0xbd   : > { %v456_v7 = vsel %vm322_vm0, %v748_v48, %v1813_v3  ;;  %v455_v8 = vsel %vm322_vm0, %v549_v41, %v1812_v4 }
  0xbe   : > { %v464_v13 = vsel %vm459_vm3, %v455_v8, %v1817_v6  ;;  %v465_v14 = vsel %vm459_vm3, %v456_v7, %v1818_v5 }
  0xbf   : > { %v470_v26 = vpack.c.bf16 %v465_v14, %v464_v13 }
  0xc2   : > { %v1826_v17 = vpop.permute.xlu0 %1825  ;;  %v1851_v32 = vpop.permute.xlu2 %1850 }
  0xc3   : > { %v1831_v18 = vpop.permute.xlu1 %1830  ;;  %v1828_v20 = vunpack.i.h.bf16 %v1826_v17  ;;  %v1827_v21 = vunpack.i.l.bf16 %v1826_v17  ;;  %v1853_v44 = vunpack.i.h.bf16 %v1851_v32  ;;  %v1852_v45 = vunpack.i.l.bf16 %v1851_v32 }
  0xc4   : > { %v1833_v24 = vunpack.i.h.bf16 %v1831_v18  ;;  %v1832_v25 = vunpack.i.l.bf16 %v1831_v18 }
  0xc5   : > { %v646_v27 = vsel %vm459_vm3, %v638_v15, %v1827_v21  ;;  %v647_v28 = vsel %vm459_vm3, %v639_v16, %v1828_v20  ;;  %v640_v50 = vsel %vm322_vm0, %v750_v19, %v1852_v45  ;;  %v641_v51 = vsel %vm322_vm0, %v553_v46, %v1853_v44 }
  0xc6   : > { %v837_v29 = vsel %vm322_vm0, %v551_v12, %v1832_v25  ;;  %v838_v30 = vsel %vm322_vm0, %v750_v19, %v1833_v24  ;;  %v652_v31 = vpack.c.bf16 %v647_v28, %v646_v27  ;;  %v1004_v27 = vld [vmem:[#allocation4 + $0x18] sm:$0xff] }
  0xc7   : > { %v845_v33 = vsel %vm459_vm3, %v837_v29, %v1837_v23  ;;  %v846_v34 = vsel %vm459_vm3, %v838_v30, %v1838_v22  ;;  %1020 = vmatpush.msrb.mxu0 %v1004_v27  ;;  %1043 = vmatpush.msra.mxu3 %v1004_v27 }
  0xc8   : > { %1616 = vmatmul.msk.bf16.gmra.mxu0 %vm496_vm4, %v470_v26  ;;  %v851_v35 = vpack.c.bf16 %v846_v34, %v845_v33 }
  0xc9   : > { %1638 = vmatmul.msk.bf16.gmra.mxu1 %vm496_vm4, %v652_v31 }
  0xca   : > { %1660 = vmatmul.msk.bf16.gmra.mxu2 %vm496_vm4, %v851_v35  ;;  %v1841_v36 = vpop.permute.xlu0 %1840  ;;  %v1866_v47 = vpop.permute.xlu2 %1865  ;;  %v1003_v35 = vld [vmem:[#allocation4 + $0x10] sm:$0xff] }
  0xcb   : > { %v1843_v37 = vunpack.i.h.bf16 %v1841_v36  ;;  %v1842_v38 = vunpack.i.l.bf16 %v1841_v36  ;;  %v1846_v39 = vpop.permute.xlu1 %1845  ;;  %v1868_v57 = vunpack.i.h.bf16 %v1866_v47  ;;  %v1867_v58 = vunpack.i.l.bf16 %v1866_v47  ;;  %1021 = vmatpush.msrb.mxu0 %v1003_v35  ;;  %1044 = vmatpush.msra.mxu3 %v1003_v35 }
  0xcc   : > { %v1848_v40 = vunpack.i.h.bf16 %v1846_v39  ;;  %v1847_v41 = vunpack.i.l.bf16 %v1846_v39 }
  0xcd   : > { %v458_v42 = vsel %vm322_vm0, %v750_v19, %v1843_v37  ;;  %v457_v43 = vsel %vm322_vm0, %v551_v12, %v1842_v38 }
  0xce   : > { %v466_v48 = vsel %vm459_vm3, %v457_v43, %v1847_v41  ;;  %v467_v49 = vsel %vm459_vm3, %v458_v42, %v1848_v40  ;;  %v1002_v42 = vld [vmem:[#allocation4 + $0x8] sm:$0xff]  ;;  %v1001_v43 = vld [vmem:[#allocation4] sm:$0xff] }
  0xcf   : > { %v471_v61 = vpack.c.bf16 %v467_v49, %v466_v48  ;;  %1022 = vmatpush.msrb.mxu0 %v1002_v42  ;;  %1045 = vmatpush.msra.mxu3 %v1002_v42 }
  0xd1   : > { %1023 = vmatpush.msrb.mxu0 %v1001_v43  ;;  %1046 = vmatpush.msra.mxu3 %v1001_v43 }
  0xd2   : > { %v1856_v52 = vpop.permute.xlu0 %1855 }
  0xd3   : > { %v1858_v53 = vunpack.i.h.bf16 %v1856_v52  ;;  %v1857_v54 = vunpack.i.l.bf16 %v1856_v52  ;;  %v1861_v55 = vpop.permute.xlu1 %1860 }
  0xd4   : > { %v1863_v59 = vunpack.i.h.bf16 %v1861_v55  ;;  %v1862_v60 = vunpack.i.l.bf16 %v1861_v55 }
  0xd5   : > { %v648_v62 = vsel %vm459_vm3, %v640_v50, %v1857_v54  ;;  %v649_v63 = vsel %vm459_vm3, %v641_v51, %v1858_v53 }
  0xd6   : > { %v839_v0 = vsel %vm322_vm0, %v553_v46, %v1862_v60  ;;  %v840_v1 = vsel %vm322_vm0, %v752_v56, %v1863_v59  ;;  %v653_v2 = vpack.c.bf16 %v649_v63, %v648_v62 }
  0xd7   : > { %v847_v3 = vsel %vm459_vm3, %v839_v0, %v1867_v58  ;;  %v848_v4 = vsel %vm459_vm3, %v840_v1, %v1868_v57 }
  0xd8   : > { %1617 = vmatmul.msk.bf16.gmra.mxu0 %vm496_vm4, %v471_v61  ;;  %v852_v5 = vpack.c.bf16 %v848_v4, %v847_v3 }
  0xd9   : > { %1639 = vmatmul.msk.bf16.gmra.mxu1 %vm496_vm4, %v653_v2 }
  0xda   : > { %1661 = vmatmul.msk.bf16.gmra.mxu2 %vm496_vm4, %v852_v5  ;;  %v1108_v5 = vld [vmem:[%s2522_s7] sm:$0xff] }
 0x123   : > { %v899_v9 = vpop.f32.mrf.mxu2 }
 0x125   : > { %v518_v6 = vpop.f32.mrf.mxu0 }
 0x126   : > { %538 = vst.msk [vmem:[#allocation3] sm:$0xff] %vm459_vm3, %v518_v6  ;;  %v700_v7 = vpop.f32.mrf.mxu1  ;;  %v1107_v6 = vld [vmem:[%s2521_s6] sm:$0xff] }
 0x12b   : > { %v901_v18 = vpop.f32.mrf.mxu2 }
 0x12d   : > { %v720_v8 = vld [vmem:[#allocation3] sm:$0xff]  ;;  %v520_v10 = vpop.f32.mrf.mxu0 }
 0x12e   : > { %v728_v11 = vadd.f32 %v720_v8, %v700_v7  ;;  %539 = vst.msk [vmem:[#allocation3 + $0x8] sm:$0xff] %vm459_vm3, %v520_v10  ;;  %v702_v12 = vpop.f32.mrf.mxu1  ;;  %v1202_v10 = vsub.f32 1.0, %v1108_v5 }
 0x130   : > { %736 = vst.msk [vmem:[#allocation3] sm:$0xff] %vm459_vm3, %v728_v11  ;;  %v1167_v11 = vsub.f32 1.0, %v1107_v6 }
 0x135   : > { %v721_v13 = vld [vmem:[#allocation3 + $0x8] sm:$0xff]  ;;  %v523_v14 = vpop.f32.mrf.mxu0 }
 0x136   : > { %v729_v15 = vadd.f32 %v721_v13, %v702_v12  ;;  %540 = vst.msk [vmem:[#allocation3 + $0x10] sm:$0xff] %vm459_vm3, %v523_v14  ;;  %v705_v16 = vpop.f32.mrf.mxu1 }
 0x137   : > { %v919_v17 = vld [vmem:[#allocation3] sm:$0xff] }
 0x138   : > { %v927_v19 = vadd.f32 %v919_v17, %v899_v9  ;;  %737 = vst.msk [vmem:[#allocation3 + $0x8] sm:$0xff] %vm459_vm3, %v729_v15  ;;  %v1999_v9 = vmov 0  }
 0x139   : > { %1870 = vset.pattern.permute.xlu1 %v1999_v9  ;;  %1869 = vset.pattern.permute.xlu0 %v1999_v9 }
 0x13a   : > { %935 = vst.msk [vmem:[#allocation3] sm:$0xff] %vm459_vm3, %v927_v19  ;;  %1218 = vperm.xlu1 %1870, %v1108_v5   ;;  %1871 = vset.pattern.permute.xlu2 %v1999_v9 }
 0x13b   : > { %1205 = vperm.xlu0 %1869, %v1202_v10   ;;  %1170 = vperm.xlu2 %1871, %v1167_v11  }
 0x13d   : > { %v722_v20 = vld [vmem:[#allocation3 + $0x10] sm:$0xff]  ;;  %v525_v21 = vpop.f32.mrf.mxu0  ;;  %v904_v25 = vpop.f32.mrf.mxu2 }
 0x13e   : > { %v730_v22 = vadd.f32 %v722_v20, %v705_v16  ;;  %541 = vst.msk [vmem:[#allocation3 + $0x18] sm:$0xff] %vm459_vm3, %v525_v21  ;;  %v707_v23 = vpop.f32.mrf.mxu1 }
 0x13f   : > { %v920_v24 = vld [vmem:[#allocation3 + $0x8] sm:$0xff] }
 0x140   : > { %v928_v26 = vadd.f32 %v920_v24, %v901_v18  ;;  %738 = vst.msk [vmem:[#allocation3 + $0x10] sm:$0xff] %vm459_vm3, %v730_v22 }
 0x141   : > { %v2283_v0 = vld [vmem:[#allocation3] sm:$0xff] }
 0x142   : > { %936 = vst.msk [vmem:[#allocation3 + $0x8] sm:$0xff] %vm459_vm3, %v928_v26  ;;  %v972_v4 = vmul.f32 %v2283_v0, %v2283_v0  ;;  %v951_v13 = vsel %vm459_vm3, %v2283_v0, 0.0  ;;  %1183 = vperm.xlu1 %1870, %v1107_v6  }
 0x144   : > { %v980_v21 = vsel %vm459_vm3, %v972_v4, 0.0 }
 0x145   : > { %v723_v28 = vld [vmem:[#allocation3 + $0x18] sm:$0xff]  ;;  %v528_v29 = vpop.f32.mrf.mxu0  ;;  %v906_v34 = vpop.f32.mrf.mxu2 }
 0x146   : > { %v731_v30 = vadd.f32 %v723_v28, %v707_v23  ;;  %542 = vst.msk [vmem:[#allocation3 + $0x20] sm:$0xff] %vm459_vm3, %v528_v29  ;;  %v710_v32 = vpop.f32.mrf.mxu1 }
 0x147   : > { %v921_v31 = vld [vmem:[#allocation3 + $0x10] sm:$0xff] }
 0x148   : > { %v929_v33 = vadd.f32 %v921_v31, %v904_v25  ;;  %739 = vst.msk [vmem:[#allocation3 + $0x18] sm:$0xff] %vm459_vm3, %v731_v30 }
 0x149   : > { %v2280_v62 = vld [vmem:[#allocation3 + $0x8] sm:$0xff] }
 0x14a   : > { %937 = vst.msk [vmem:[#allocation3 + $0x10] sm:$0xff] %vm459_vm3, %v929_v33  ;;  %v973_v2 = vmul.f32 %v2280_v62, %v2280_v62  ;;  %v952_v7 = vsel %vm459_vm3, %v2280_v62, 0.0 }
 0x14b   : > { %v953_v20 = vadd.f32 %v952_v7, %v951_v13 }
 0x14c   : > { %v981_v16 = vsel %vm459_vm3, %v973_v2, 0.0 }
 0x14d   : > { %v724_v36 = vld [vmem:[#allocation3 + $0x20] sm:$0xff]  ;;  %v530_v37 = vpop.f32.mrf.mxu0  ;;  %v909_v44 = vpop.f32.mrf.mxu2  ;;  %v982_v28 = vadd.f32 %v981_v16, %v980_v21 }
 0x14e   : > { %v732_v38 = vadd.f32 %v724_v36, %v710_v32  ;;  %543 = vst.msk [vmem:[#allocation3 + $0x28] sm:$0xff] %vm459_vm3, %v530_v37  ;;  %v712_v41 = vpop.f32.mrf.mxu1 }
 0x14f   : > { %v922_v39 = vld [vmem:[#allocation3 + $0x18] sm:$0xff] }
 0x150   : > { %v930_v40 = vadd.f32 %v922_v39, %v906_v34  ;;  %740 = vst.msk [vmem:[#allocation3 + $0x20] sm:$0xff] %vm459_vm3, %v732_v38 }
 0x151   : > { %v2285_v1 = vld [vmem:[#allocation3 + $0x10] sm:$0xff] }
 0x152   : > { %938 = vst.msk [vmem:[#allocation3 + $0x18] sm:$0xff] %vm459_vm3, %v930_v40  ;;  %v974_v8 = vmul.f32 %v2285_v1, %v2285_v1  ;;  %v954_v14 = vsel %vm459_vm3, %v2285_v1, 0.0 }
 0x153   : > { %v955_v27 = vadd.f32 %v954_v14, %v953_v20 }
 0x154   : > { %v983_v25 = vsel %vm459_vm3, %v974_v8, 0.0 }
 0x155   : > { %v725_v45 = vld [vmem:[#allocation3 + $0x28] sm:$0xff]  ;;  %v533_v46 = vpop.f32.mrf.mxu0  ;;  %v911_v51 = vpop.f32.mrf.mxu2  ;;  %v984_v33 = vadd.f32 %v983_v25, %v982_v28 }
 0x156   : > { %v733_v47 = vadd.f32 %v725_v45, %v712_v41  ;;  %544 = vst.msk [vmem:[#allocation3 + $0x30] sm:$0xff] %vm459_vm3, %v533_v46  ;;  %v715_v50 = vpop.f32.mrf.mxu1 }
 0x157   : > { %v923_v48 = vld [vmem:[#allocation3 + $0x20] sm:$0xff] }
 0x158   : > { %v931_v49 = vadd.f32 %v923_v48, %v909_v44  ;;  %741 = vst.msk [vmem:[#allocation3 + $0x28] sm:$0xff] %vm459_vm3, %v733_v47 }
 0x159   : > { %v2290_v3 = vld [vmem:[#allocation3 + $0x18] sm:$0xff] }
 0x15a   : > { %939 = vst.msk [vmem:[#allocation3 + $0x20] sm:$0xff] %vm459_vm3, %v931_v49  ;;  %v975_v15 = vmul.f32 %v2290_v3, %v2290_v3  ;;  %v956_v23 = vsel %vm459_vm3, %v2290_v3, 0.0 }
 0x15b   : > { %v957_v32 = vadd.f32 %v956_v23, %v955_v27 }
 0x15c   : > { %v985_v31 = vsel %vm459_vm3, %v975_v15, 0.0 }
 0x15d   : > { %v726_v52 = vld [vmem:[#allocation3 + $0x30] sm:$0xff]  ;;  %v535_v53 = vpop.f32.mrf.mxu0  ;;  %v914_v59 = vpop.f32.mrf.mxu2  ;;  %v986_v38 = vadd.f32 %v985_v31, %v984_v33 }
 0x15e   : > { %v734_v54 = vadd.f32 %v726_v52, %v715_v50  ;;  %545 = vst.msk [vmem:[#allocation3 + $0x38] sm:$0xff] %vm459_vm3, %v535_v53  ;;  %v717_v57 = vpop.f32.mrf.mxu1 }
 0x15f   : > { %v924_v55 = vld [vmem:[#allocation3 + $0x28] sm:$0xff] }
 0x160   : > { %v932_v56 = vadd.f32 %v924_v55, %v911_v51  ;;  %742 = vst.msk [vmem:[#allocation3 + $0x30] sm:$0xff] %vm459_vm3, %v734_v54 }
 0x161   : > { %v2304_v12 = vld [vmem:[#allocation3 + $0x20] sm:$0xff] }
 0x162   : > { %940 = vst.msk [vmem:[#allocation3 + $0x28] sm:$0xff] %vm459_vm3, %v932_v56  ;;  %v976_v24 = vmul.f32 %v2304_v12, %v2304_v12  ;;  %v958_v29 = vsel %vm459_vm3, %v2304_v12, 0.0 }
 0x163   : > { %v959_v37 = vadd.f32 %v958_v29, %v957_v32  ;;  %v1892_v29 = vld [vmem:[%s2518_s3] ss:$0 sm:$0xff] }
 0x164   : > { %v987_v36 = vsel %vm459_vm3, %v976_v24, 0.0 }
 0x165   : > { %v727_v58 = vld [vmem:[#allocation3 + $0x38] sm:$0xff]  ;;  %v916_v17 = vpop.f32.mrf.mxu2  ;;  %v988_v42 = vadd.f32 %v987_v36, %v986_v38 }
 0x166   : > { %v735_v60 = vadd.f32 %v727_v58, %v717_v57 }
 0x167   : > { %v925_v61 = vld [vmem:[#allocation3 + $0x30] sm:$0xff] }
 0x168   : > { %743 = vst.msk [vmem:[#allocation3 + $0x38] sm:$0xff] %vm459_vm3, %v735_v60  ;;  %v933_v63 = vadd.f32 %v925_v61, %v914_v59 }
 0x169   : > { %v2313_v19 = vld [vmem:[#allocation3 + $0x28] sm:$0xff] }
 0x16a   : > { %941 = vst.msk [vmem:[#allocation3 + $0x30] sm:$0xff] %vm459_vm3, %v933_v63  ;;  %v977_v30 = vmul.f32 %v2313_v19, %v2313_v19  ;;  %v960_v34 = vsel %vm459_vm3, %v2313_v19, 0.0 }
 0x16b   : > { %v961_v41 = vadd.f32 %v960_v34, %v959_v37 }
 0x16c   : > { %v989_v40 = vsel %vm459_vm3, %v977_v30, 0.0 }
 0x16d   : > { %v990_v46 = vadd.f32 %v989_v40, %v988_v42 }
 0x16f   : > { %v926_v18 = vld [vmem:[#allocation3 + $0x38] sm:$0xff] }
 0x170   : > { %v934_v22 = vadd.f32 %v926_v18, %v916_v17 }
 0x171   : > { %v2321_v26 = vld [vmem:[#allocation3 + $0x30] sm:$0xff] }
 0x172   : > { %942 = vst.msk [vmem:[#allocation3 + $0x38] sm:$0xff] %vm459_vm3, %v934_v22  ;;  %v978_v35 = vmul.f32 %v2321_v26, %v2321_v26  ;;  %v962_v39 = vsel %vm459_vm3, %v2321_v26, 0.0  ;;  %v1076_v22 = vld [vmem:[%s2517_s2] sm:$0x1] }
 0x173   : > { %v963_v45 = vadd.f32 %v962_v39, %v961_v41 }
 0x174   : > { %v991_v43 = vsel %vm459_vm3, %v978_v35, 0.0 }
 0x175   : > { %v992_v50 = vadd.f32 %v991_v43, %v990_v46 }
 0x179   : > { %v950_v44 = vld [vmem:[#allocation3 + $0x38] sm:$0xff] }
 0x17a   : > { %v964_v47 = vsel %vm459_vm3, %v950_v44, 0.0  ;;  %v979_v48 = vmul.f32 %v950_v44, %v950_v44 }
 0x17b   : > { %v965_v49 = vadd.f32 %v964_v47, %v963_v45 }
 0x17c   : > { %v993_v51 = vsel %vm459_vm3, %v979_v48, 0.0 }
 0x17d   : > { %v966_v52 = vrot.slane %v965_v49, 4  ;;  %v994_v53 = vadd.f32 %v993_v51, %v992_v50 }
 0x17f   : > { %v967_v54 = vadd.f32 %v966_v52, %v965_v49  ;;  %v995_v55 = vrot.slane %v994_v53, 4 }
 0x181   : > { %v968_v56 = vrot.slane %v967_v54, 2  ;;  %v996_v57 = vadd.f32 %v995_v55, %v994_v53 }
 0x183   : > { %v969_v58 = vadd.f32 %v968_v56, %v967_v54  ;;  %v997_v59 = vrot.slane %v996_v57, 2 }
 0x185   : > { %v970_v60 = vrot.slane %v969_v58, 1  ;;  %v998_v61 = vadd.f32 %v997_v59, %v996_v57 }
 0x187   : > { %v971_v63 = vadd.f32 %v970_v60, %v969_v58  ;;  %v999_v2 = vrot.slane %v998_v61, 1 }
 0x189   : > { %1662 = vmatmul.msk.f32.vlgmr.msrb.gmra.mxu0 %vm459_vm3, %v971_v63  ;;  %v1000_v4 = vadd.f32 %v999_v2, %v998_v61 }
 0x18b   : > { %1663 = vmatmul.msk.f32.vlgmr.msra.gmra.mxu3 %vm459_vm3, %v1000_v4 }
 0x1ac   : > { %v1219_v63 = vpop.permute.xlu1 %1218 }
 0x206   : > { %v1025_v5 = vpop.f32.mrf.mxu0 }
 0x207   : > { %v1051_v6 = vmul.f32 0.015625, %v1025_v5 }
 0x209   : > { %v1053_v8 = vmul.f32 %v1051_v6, %v1051_v6  ;;  %v1067_v20 = vperm.slane %v1051_v6, 0 }
 0x20b   : > { %v1070_v25 = vsub.f32 %v2285_v1, %v1067_v20  ;;  %v1075_v27 = vsub.f32 %v950_v44, %v1067_v20  ;;  %v1069_v30 = vsub.f32 %v2280_v62, %v1067_v20  ;;  %v1071_v31 = vsub.f32 %v2290_v3, %v1067_v20 }
 0x20c   : > { %v1068_v32 = vsub.f32 %v2283_v0, %v1067_v20  ;;  %v1073_v33 = vsub.f32 %v2313_v19, %v1067_v20  ;;  %v1072_v34 = vsub.f32 %v2304_v12, %v1067_v20  ;;  %v1074_v35 = vsub.f32 %v2321_v26, %v1067_v20  ;;  %v1206_v0 = vpop.permute.xlu0 %1205 }
 0x20e   : > { %v1048_v7 = vpop.f32.mrf.mxu3 }
 0x20f   : > { %v1052_v9 = vmul.f32 0.015625, %v1048_v7 }
 0x211   : > { %v1054_v10 = vsub.f32 %v1052_v9, %v1053_v8 }
 0x213   : > { %v1055_v11 = vmax.f32 %v1054_v10, 0.0 }
 0x215   : > { %v1056_v13 = vadd.f32 1e-05, %v1055_v11 }
 0x217   : > { %1893 = vrsqrt.f32 %v1056_v13  ;;  %vm1063_vm6 = vweird.f32 %v1056_v13 }
 0x21d   : > { %v1894_v14 = vpop.eup %1893 }
 0x21e   : > { %v1058_v15 = vmul.f32 %v1894_v14, %v1056_v13  ;;  %vm1064_vm5 = vweird.f32 %v1894_v14 }
 0x21f   : > { %vm1065_vm7 = vmor %vm1063_vm6, %vm1064_vm5 }
 0x220   : > { %v1059_v16 = vmul.f32 %v1894_v14, %v1058_v15 }
 0x222   : > { %v1060_v17 = vmul.f32 0.5, %v1059_v16 }
 0x224   : > { %v1061_v18 = vsub.f32 1.5, %v1060_v17 }
 0x226   : > { %v1062_v21 = vmul.f32 %v1894_v14, %v1061_v18 }
 0x228   : > { %v1066_v23 = vsel %vm1065_vm7, %v1894_v14, %v1062_v21 }
 0x229   : > { %v1077_v24 = vmul.f32 %v1076_v22, %v1066_v23 }
 0x22b   : > { %v1078_v28 = vperm.slane %v1077_v24, 0 }
 0x22d   : > { %v1081_v1 = vmul.f32 %v1078_v28, %v1070_v25  ;;  %v1086_v36 = vmul.f32 %v1078_v28, %v1075_v27  ;;  %v1080_v37 = vmul.f32 %v1078_v28, %v1069_v30  ;;  %v1082_v38 = vmul.f32 %v1078_v28, %v1071_v31 }
 0x22e   : > { %v1079_v39 = vmul.f32 %v1078_v28, %v1068_v32  ;;  %v1084_v40 = vmul.f32 %v1078_v28, %v1073_v33  ;;  %v1083_v41 = vmul.f32 %v1078_v28, %v1072_v34  ;;  %v1085_v42 = vmul.f32 %v1078_v28, %v1074_v35 }
 0x22f   : > { %v1093_v62 = vadd.f32 %v1892_v29, %v1081_v1  ;;  %v1098_v43 = vadd.f32 %v1892_v29, %v1086_v36  ;;  %v1092_v3 = vadd.f32 %v1892_v29, %v1080_v37  ;;  %v1094_v44 = vadd.f32 %v1892_v29, %v1082_v38 }
 0x230   : > { %v1091_v45 = vadd.f32 %v1892_v29, %v1079_v39  ;;  %v1096_v46 = vadd.f32 %v1892_v29, %v1084_v40  ;;  %v1095_v19 = vadd.f32 %v1892_v29, %v1083_v41  ;;  %v1097_v47 = vadd.f32 %v1892_v29, %v1085_v42 }
 0x231   : > { %v2355_v12 = vmax.f32 %v1093_v62, 0.0  ;;  %v2357_v26 = vmax.f32 %v1098_v43, 0.0  ;;  %v2359_v48 = vmax.f32 %v1092_v3, 0.0  ;;  %v2361_v49 = vmax.f32 %v1094_v44, 0.0  ;;  %v1171_v62 = vpop.permute.xlu2 %1170  ;;  %v1184_v44 = vpop.permute.xlu1 %1183 }
 0x232   : > { %v2363_v50 = vmax.f32 %v1091_v45, 0.0  ;;  %v2365_v51 = vmax.f32 %v1096_v46, 0.0  ;;  %v2367_v52 = vmax.f32 %v1095_v19, 0.0  ;;  %v2369_v53 = vmax.f32 %v1097_v47, 0.0 }
 0x233   : > { %v1144_v54 = vrot.slane %v2355_v12, 1  ;;  %v1149_v55 = vrot.slane %v2357_v26, 1  ;;  %v1210_v56 = vmul.f32 %v1206_v0, %v2355_v12  ;;  %v1215_v57 = vmul.f32 %v1206_v0, %v2357_v26 }
 0x234   : > { %v1143_v58 = vrot.slane %v2359_v48, 1  ;;  %v1145_v59 = vrot.slane %v2361_v49, 1  ;;  %v1209_v60 = vmul.f32 %v1206_v0, %v2359_v48  ;;  %v1211_v61 = vmul.f32 %v1206_v0, %v2361_v49 }
 0x235   : > { %v1161_v2 = vsel %vm1158_vm8, %v1144_v54, %v2355_v12  ;;  %v1166_v4 = vsel %vm1158_vm8, %v1149_v55, %v2357_v26  ;;  %v1142_v5 = vrot.slane %v2363_v50, 1  ;;  %v1147_v6 = vrot.slane %v2365_v51, 1 }
 0x236   : > { %v1223_v7 = vmul.f32 %v1219_v63, %v1161_v2  ;;  %v1228_v8 = vmul.f32 %v1219_v63, %v1166_v4  ;;  %v1160_v9 = vsel %vm1158_vm8, %v1143_v58, %v2359_v48  ;;  %v1162_v10 = vsel %vm1158_vm8, %v1145_v59, %v2361_v49 }
 0x237   : > { %v1222_v11 = vmul.f32 %v1219_v63, %v1160_v9  ;;  %v1224_v13 = vmul.f32 %v1219_v63, %v1162_v10  ;;  %v1159_v14 = vsel %vm1158_vm8, %v1142_v5, %v2363_v50  ;;  %v1164_v15 = vsel %vm1158_vm8, %v1147_v6, %v2365_v51 }
 0x238   : > { %v1231_v16 = vadd.f32 %v1223_v7, %v1210_v56  ;;  %v1236_v17 = vadd.f32 %v1228_v8, %v1215_v57  ;;  %v1208_v18 = vmul.f32 %v1206_v0, %v2363_v50  ;;  %v1213_v20 = vmul.f32 %v1206_v0, %v2365_v51 }
 0x239   : > { %v1230_v21 = vadd.f32 %v1222_v11, %v1209_v60  ;;  %v1232_v22 = vadd.f32 %v1224_v13, %v1211_v61  ;;  %v1221_v23 = vmul.f32 %v1219_v63, %v1159_v14  ;;  %v1226_v24 = vmul.f32 %v1219_v63, %v1164_v15 }
 0x23a   : > { %v1877_v25 = vpack.i.bf16 %v1236_v17, %v1231_v16  ;;  %v1146_v27 = vrot.slane %v2367_v52, 1  ;;  %v1148_v28 = vrot.slane %v2369_v53, 1  ;;  %v1212_v34 = vmul.f32 %v1206_v0, %v2367_v52 }
 0x23b   : > { %v1872_v29 = vpack.i.bf16 %v1230_v21, %v1232_v22  ;;  %v1229_v30 = vadd.f32 %v1221_v23, %v1208_v18  ;;  %v1234_v31 = vadd.f32 %v1226_v24, %v1213_v20  ;;  %v1214_v1 = vmul.f32 %v1206_v0, %v2369_v53 }
 0x23c   : > { %1878 = vrot.lane.b32.xlu0 %v1877_v25, %s1998_s17  ;;  %v1163_v32 = vsel %vm1158_vm8, %v1146_v27, %v2367_v52  ;;  %v1165_v33 = vsel %vm1158_vm8, %v1148_v28, %v2369_v53  ;;  %v1120_v41 = vrot.slane %v2361_v49, 7  ;;  %v1118_v42 = vrot.slane %v2359_v48, 7 }
 0x23d   : > { %1873 = vrot.lane.b32.xlu2 %v1872_v29, %s1998_s17  ;;  %v1882_v35 = vpack.i.bf16 %v1234_v31, %v1229_v30  ;;  %v1225_v36 = vmul.f32 %v1219_v63, %v1163_v32  ;;  %v1227_v37 = vmul.f32 %v1219_v63, %v1165_v33  ;;  %v1121_v46 = vrot.slane %v2367_v52, 7 }
 0x23e   : > { %v1137_v43 = vsel %vm1133_vm9, %v2361_v49, %v1120_v41  ;;  %v1135_v3 = vsel %vm1133_vm9, %v2359_v48, %v1118_v42  ;;  %v1123_v19 = vrot.slane %v2369_v53, 7  ;;  %v1187_v47 = vmul.f32 %v1184_v44, %v2359_v48 }
 0x23f   : > { %1883 = vrot.lane.b32.xlu1 %v1882_v35, %s1998_s17  ;;  %v1233_v38 = vadd.f32 %v1225_v36, %v1212_v34  ;;  %v1235_v39 = vadd.f32 %v1227_v37, %v1214_v1  ;;  %v1176_v0 = vmul.f32 %v1171_v62, %v1137_v43  ;;  %v1174_v45 = vmul.f32 %v1171_v62, %v1135_v3 }
 0x240   : > { %v1189_v54 = vmul.f32 %v1184_v44, %v2361_v49  ;;  %v1138_v60 = vsel %vm1133_vm9, %v2367_v52, %v1121_v46  ;;  %v1140_v61 = vsel %vm1133_vm9, %v2369_v53, %v1123_v19  ;;  %v1190_v8 = vmul.f32 %v1184_v44, %v2367_v52 }
 0x241   : > { %v1887_v40 = vpack.i.bf16 %v1233_v38, %v1235_v39  ;;  %v1195_v59 = vadd.f32 %v1187_v47, %v1174_v45  ;;  %v1177_v5 = vmul.f32 %v1171_v62, %v1138_v60  ;;  %v1179_v49 = vmul.f32 %v1171_v62, %v1140_v61 }
 0x242   : > { %v1197_v56 = vadd.f32 %v1189_v54, %v1176_v0  ;;  %v1192_v9 = vmul.f32 %v1184_v44, %v2369_v53  ;;  %v1124_v21 = vrot.slane %v2357_v26, 7  ;;  %v1119_v22 = vrot.slane %v2355_v12, 7 }
 0x243   : > { %v1198_v11 = vadd.f32 %v1190_v8, %v1177_v5  ;;  %v1122_v53 = vrot.slane %v2365_v51, 7  ;;  %v1117_v24 = vrot.slane %v2363_v50, 7  ;;  %v2000_v28 = vmov 1983009808  }
 0x244   : > { %v1200_v13 = vadd.f32 %v1192_v9, %v1179_v49  ;;  %v1141_v25 = vsel %vm1133_vm9, %v2357_v26, %v1124_v21  ;;  %v1136_v27 = vsel %vm1133_vm9, %v2355_v12, %v1119_v22  ;;  %v1283_v29 = vunpack.c.l.s4 %v2000_v28 }
 0x245   : > { %1888 = vrot.lane.b32.xlu2 %v1887_v40, %s1998_s17  ;;  %v1139_v30 = vsel %vm1133_vm9, %v2365_v51, %v1122_v53  ;;  %v1134_v31 = vsel %vm1133_vm9, %v2363_v50, %v1117_v24  ;;  %v1180_v32 = vmul.f32 %v1171_v62, %v1141_v25  ;;  %v1175_v33 = vmul.f32 %v1171_v62, %v1136_v27  ;;  %s2002_s17 = smov 64  }
 0x246   : > { %v1178_v34 = vmul.f32 %v1171_v62, %v1139_v30  ;;  %v1173_v35 = vmul.f32 %v1171_v62, %v1134_v31  ;;  %v1284_v1 = vunpack.c.0.s8 %v1283_v29  ;;  %v1188_v36 = vmul.f32 %v1184_v44, %v2355_v12 }
 0x247   : > { %v1193_v37 = vmul.f32 %v1184_v44, %v2357_v26  ;;  %v1186_v39 = vmul.f32 %v1184_v44, %v2363_v50  ;;  %v1191_v40 = vmul.f32 %v1184_v44, %v2365_v51  ;;  %v2001_v12 = vmov 1934713408  }
 0x248   : > { %v1196_v3 = vadd.f32 %v1188_v36, %v1175_v33  ;;  %v1331_v54 = vunpack.c.l.s4 %v2001_v12 }
 0x249   : > { %v1201_v41 = vadd.f32 %v1193_v37, %v1180_v32  ;;  %v1199_v0 = vadd.f32 %v1191_v40, %v1178_v34  ;;  %v1194_v45 = vadd.f32 %v1186_v39, %v1173_v35 }
 0x24a   : > { %v1332_v49 = vunpack.c.0.s8 %v1331_v54 }
 0x297   : > { %v1874_v55 = vpop.permute.xlu2 %1873 }
 0x298   : > { %v1876_v57 = vunpack.i.h.bf16 %v1874_v55  ;;  %v1875_v58 = vunpack.i.l.bf16 %v1874_v55 }
 0x29a   : > { %v1270_v63 = vsel %vm459_vm3, %v1195_v59, %v1876_v57  ;;  %v1272_v2 = vsel %vm459_vm3, %v1197_v56, %v1875_v58 }
 0x29b   : > { %v1290_v4 = vrot.slane %v1272_v2, 4  ;;  %v1292_v48 = vrot.slane %v1270_v63, 4 }
 0x29d   : > { %v1291_v6 = vsel %vm1278_vm10, %v1290_v4, %v1270_v63  ;;  %v1293_v7 = vsel %vm1278_vm10, %v1272_v2, %v1292_v48 }
 0x29e   : > { %v1297_v46 = vperm.slane %v1291_v6, %v1284_v1  ;;  %v1301_v57 = vperm.slane %v1293_v7, %v1284_v1 }
 0x29f   : > { %v1889_v10 = vpop.permute.xlu2 %1888 }
 0x2a0   : > { %v1891_v14 = vunpack.i.h.bf16 %v1889_v10  ;;  %v1890_v15 = vunpack.i.l.bf16 %v1889_v10  ;;  %v1326_v4 = vrot.slane %v1297_v46, 4  ;;  %v1338_v6 = vrot.slane %v1301_v57, 4 }
 0x2a2   : > { %v1273_v16 = vsel %vm459_vm3, %v1198_v11, %v1891_v14  ;;  %v1275_v17 = vsel %vm459_vm3, %v1200_v13, %v1890_v15 }
 0x2a3   : > { %v1304_v18 = vrot.slane %v1273_v16, 4  ;;  %v1302_v20 = vrot.slane %v1275_v17, 4 }
 0x2a5   : > { %v1303_v23 = vsel %vm1278_vm10, %v1302_v20, %v1273_v16  ;;  %v1305_v52 = vsel %vm1278_vm10, %v1275_v17, %v1304_v18 }
 0x2a6   : > { %v1309_v51 = vperm.slane %v1303_v23, %v1284_v1  ;;  %v1313_v44 = vperm.slane %v1305_v52, %v1284_v1 }
 0x2a8   : > { %v1352_v8 = vrot.slane %v1309_v51, 4  ;;  %v1364_v15 = vrot.slane %v1313_v44, 4 }
 0x2ae   : > { %v1879_v38 = vpop.permute.xlu0 %1878 }
 0x2af   : > { %v1881_v42 = vunpack.i.h.bf16 %v1879_v38  ;;  %v1880_v43 = vunpack.i.l.bf16 %v1879_v38 }
 0x2b1   : > { %v1276_v19 = vsel %vm459_vm3, %v1201_v41, %v1881_v42  ;;  %v1271_v62 = vsel %vm459_vm3, %v1196_v3, %v1880_v43  ;;  %v1884_v47 = vpop.permute.xlu1 %1883 }
 0x2b2   : > { %v1314_v26 = vrot.slane %v1276_v19, 4  ;;  %v1277_v55 = vrot.slane %v1271_v62, 4  ;;  %v1886_v56 = vunpack.i.h.bf16 %v1884_v47  ;;  %v1885_v50 = vunpack.i.l.bf16 %v1884_v47 }
 0x2b4   : > { %v1274_v58 = vsel %vm459_vm3, %v1199_v0, %v1886_v56  ;;  %v1269_v59 = vsel %vm459_vm3, %v1194_v45, %v1885_v50 }
 0x2b5   : > { %v1315_v60 = vsel %vm1278_vm10, %v1314_v26, %v1274_v58  ;;  %v1316_v61 = vrot.slane %v1274_v58, 4  ;;  %v1279_v63 = vsel %vm1278_vm10, %v1277_v55, %v1269_v59  ;;  %v1280_v2 = vrot.slane %v1269_v59, 4 }
 0x2b6   : > { %v1321_v48 = vperm.slane %v1315_v60, %v1284_v1  ;;  %v1285_v5 = vperm.slane %v1279_v63, %v1284_v1 }
 0x2b7   : > { %v1317_v7 = vsel %vm1278_vm10, %v1276_v19, %v1316_v61  ;;  %v1281_v9 = vsel %vm1278_vm10, %v1271_v62, %v1280_v2 }
 0x2b8   : > { %v1325_v10 = vperm.slane %v1317_v7, %v1284_v1  ;;  %v1350_v11 = vrot.slane %v1321_v48, 4  ;;  %v1289_v13 = vperm.slane %v1281_v9, %v1284_v1  ;;  %v1328_v14 = vrot.slane %v1285_v5, 4 }
 0x2b9   : > { %v1327_v16 = vsel %vm1278_vm10, %v1326_v4, %v1285_v5  ;;  %v1353_v17 = vsel %vm1278_vm10, %v1321_v48, %v1352_v8 }
 0x2ba   : > { %v1339_v18 = vsel %vm1278_vm10, %v1338_v6, %v1289_v13  ;;  %v1362_v20 = vrot.slane %v1325_v10, 4  ;;  %v1333_v21 = vperm.slane %v1327_v16, %v1332_v49  ;;  %v1351_v22 = vsel %vm1278_vm10, %v1350_v11, %v1309_v51 }
 0x2bb   : > { %v1345_v23 = vperm.slane %v1339_v18, %v1332_v49  ;;  %v1357_v52 = vperm.slane %v1351_v22, %v1332_v49  ;;  %v1329_v53 = vsel %vm1278_vm10, %v1297_v46, %v1328_v14  ;;  %v1361_v24 = vperm.slane %v1353_v17, %v1332_v49 }
 0x2bc   : > { %v1363_v25 = vsel %vm1278_vm10, %v1362_v20, %v1313_v44  ;;  %v1376_v27 = vrot.slane %v1333_v21, 4  ;;  %v1337_v28 = vperm.slane %v1329_v53, %v1332_v49  ;;  %v1340_v29 = vrot.slane %v1289_v13, 4  ;;  %v1687_v44 = vld [vmem:[%s2520_s5] sm:$0xff] }
 0x2bd   : > { %v1369_v30 = vperm.slane %v1363_v25, %v1332_v49  ;;  %v1384_v31 = vrot.slane %v1345_v23, 4  ;;  %v1374_v32 = vrot.slane %v1357_v52, 4  ;;  %v1378_v33 = vrot.slane %v1361_v24, 4 }
 0x2be   : > { %v1377_v34 = vsel %vm1278_vm10, %v1357_v52, %v1376_v27  ;;  %v1380_v35 = vrot.slane %v1337_v28, 4  ;;  %v1341_v1 = vsel %vm1278_vm10, %v1301_v57, %v1340_v29  ;;  %v1365_v36 = vsel %vm1278_vm10, %v1325_v10, %v1364_v15 }
 0x2bf   : > { %v1382_v37 = vrot.slane %v1369_v30, 4  ;;  %v1385_v38 = vsel %vm1278_vm10, %v1369_v30, %v1384_v31  ;;  %1391 = vrot.lane.b32.xlu0 %v1377_v34, %s2002_s17  ;;  %v1349_v39 = vperm.slane %v1341_v1, %v1332_v49  ;;  %v1373_v40 = vperm.slane %v1365_v36, %v1332_v49 }
 0x2c0   : > { %1399 = vrot.lane.b32.xlu2 %v1385_v38, %s2002_s17  ;;  %v1381_v41 = vsel %vm1278_vm10, %v1361_v24, %v1380_v35  ;;  %v1375_v42 = vsel %vm1278_vm10, %v1374_v32, %v1333_v21  ;;  %v1379_v43 = vsel %vm1278_vm10, %v1378_v33, %v1337_v28 }
 0x2c1   : > { %1395 = vrot.lane.b32.xlu1 %v1381_v41, %s2002_s17  ;;  %v1386_v3 = vrot.slane %v1373_v40, 4  ;;  %v1388_v0 = vrot.slane %v1349_v39, 4  ;;  %v1383_v45 = vsel %vm1278_vm10, %v1382_v37, %v1345_v23 }
 0x2c3   : > { %v1389_v46 = vsel %vm1278_vm10, %v1373_v40, %v1388_v0  ;;  %v1387_v19 = vsel %vm1278_vm10, %v1386_v3, %v1349_v39 }
 0x2c7   : > { %1403 = vrot.lane.b32.xlu0 %v1389_v46, %s2002_s17  ;;  %s1504_s17 = scalar_lea.sflag [#allocation6], %s313_s24 }
 0x31a   : > { %v1400_v62 = vpop.permute.xlu2 %1399 }
 0x31b   : > { %v1409_v12 = vsel %vm1406_vm11, %v1383_v45, %v1400_v62 }
 0x31c   : > { %v1415_v50 = vpack.c.bf16 %v1409_v12, %v1409_v12 }
 0x31e   : > { %v1434_v59 = vsel %vm1426_vm12, %v1415_v50, 0 }
 0x331   : > { %v1392_v47 = vpop.permute.xlu0 %1391 }
 0x332   : > { %v1407_v54 = vsel %vm1406_vm11, %v1375_v42, %v1392_v47 }
 0x333   : > { %v1413_v26 = vpack.c.bf16 %v1407_v54, %v1407_v54  ;;  %v1396_v55 = vpop.permute.xlu1 %1395 }
 0x334   : > { %v1408_v56 = vsel %vm1406_vm11, %v1379_v43, %v1396_v55 }
 0x335   : > { %v1414_v57 = vpack.c.bf16 %v1408_v56, %v1408_v56  ;;  %v1428_v51 = vsel %vm1426_vm12, %v1413_v26, 0 }
 0x336   : > { %1446 = vmatpush.bf16.msrb.mxu3 %v1428_v51 }
 0x337   : > { %v1431_v58 = vsel %vm1426_vm12, %v1414_v57, 0 }
 0x339   : > { %1668 = vmatmul.msk.bf16.vlgmr.msrb.gmra.mxu3 %vm1422_vm13, %v1687_v44  ;;  %v1404_v60 = vpop.permute.xlu0 %1403 }
 0x33a   : > { %1460 = vmatpush.bf16.msra.mxu3 %v1431_v58  ;;  %v1410_v61 = vsel %vm1406_vm11, %v1387_v19, %v1404_v60 }
 0x33b   : > { %v1416_v63 = vpack.c.bf16 %v1410_v61, %v1410_v61 }
 0x33d   : > { %v1437_v2 = vsel %vm1426_vm12, %v1416_v63, 0 }
 0x33e   : > { %1474 = vmatpush.bf16.msrb.mxu3 %v1434_v59 }
 0x349   : > { %1669 = vmatmul.msk.bf16.vlgmr.msra.gmra.mxu3 %vm1422_vm13, %v1687_v44 }
 0x34a   : > { %1488 = vmatpush.bf16.msra.mxu3 %v1437_v2 }
 0x359   : > { %1670 = vmatmul.msk.bf16.vlgmr.msrb.gmra.mxu3 %vm1422_vm13, %v1687_v44 }
 0x369   : > { %1671 = vmatmul.msk.bf16.vlgmr.msra.gmra.mxu3 %vm1422_vm13, %v1687_v44 }
 0x3bc   : > { %v1448_v4 = vpop.f32.mrf.mxu3 }
 0x3c4   : > { %v1450_v48 = vpop.f32.mrf.mxu3 }
 0x3cc   : > { %v1462_v5 = vpop.f32.mrf.mxu3 }
 0x3cd   : > { %v1495_v49 = vpack.c.bf16 %v1462_v5, %v1448_v4 }
 0x3cf   : > { %1499 = vst [vmem:[%s315_s26] sm:$0xff] %v1495_v49 }
 0x3d4   : > { %v1464_v6 = vpop.f32.mrf.mxu3 }
 0x3d5   : > { %v1497_v8 = vpack.c.bf16 %v1464_v6, %v1450_v48 }
 0x3d7   : > { %1501 = vst [vmem:[%s315_s26 + $0x10] sm:$0xff] %v1497_v8 }
 0x3dc   : > { %v1476_v7 = vpop.f32.mrf.mxu3 }
 0x3e4   : > { %v1478_v9 = vpop.f32.mrf.mxu3 }
 0x3ec   : > { %v1490_v10 = vpop.f32.mrf.mxu3 }
 0x3ed   : > { %v1496_v11 = vpack.c.bf16 %v1490_v10, %v1476_v7 }
 0x3ef   : > { %1500 = vst [vmem:[%s315_s26 + $0x8] sm:$0xff] %v1496_v11 }
 0x3f4   : > { %v1492_v13 = vpop.f32.mrf.mxu3 }
 0x3f5   : > { %v1498_v14 = vpack.c.bf16 %v1492_v13, %v1478_v9 }
 0x3f7   : > { %1502 = vst [vmem:[%s315_s26 + $0x18] sm:$0xff] %v1498_v14 }
 0x3f8   : > { %1952 = shalt.err (!%p1949_p8)
}
 0x3f9   : > { %s2003_s24 = smov 256  }
 0x3fa   : > { %1693 = dma.vmem_to_hbm [thread:$0]  (%p2087_p5), %s1517_s20, 512, %s1519_s21, %s1504_s17, %s2003_s24, %s2003_s24, %s1997_s13  }
 0x3fb PF: > { %p1705_p9 = scmp.ge.s32.totalorder %s1991_s30, 2  ;;  %s1533_s26 = sand.u32 1, %s1979_s27  }
 0x3fc   : > { %s1534_s19 = scalar_lea.sflag [#allocation6], %s1533_s26 }
 0x3fd   : > { %p1700_p10 = pnand %p1705_p9, %p2091_p6 }
 0x3ff   : > { %p1701_p11 = pneg %p1700_p10 }
 0x401   : > { %1974 = dma.done.wait (%p1701_p11), %s1534_s19, 512  }
 0x402   : > { %1976 = vsyncadd (%p1701_p11), %s1534_s19, 4294966784  ;;  %p19_p12 = scmp.ge.s32.totalorder %s2074_s11, 4   ;;  %s2526_s27 = smov %s1983_s28 }
 0x403   : > { %s2527_s28 = smov %s1987_s29  ;;  %s2528_s29 = smov %s2085_s14 }
 0x404   : > { %s2529_s30 = smov %s2074_s11  ;;  %21 = sbr.rel (!%p19_p12) target bundleno = 4 (0x4), region = 97 }
 0x409   :  { %1540 = vsyncpa [#allocation5], 1 }
 0x40a   :  { %1542 = vsyncpa [#allocation5 + $0x1], 1 }
 0x40b   :  { %1543 = vsyncpa [#allocation6], 1 }
 0x40c   :  { %1545 = vsyncpa [#allocation6 + $0x1], 1 }

</bundles_post_ra>
